<compile_context>
chip_gen: v7x
topology: tpu7x:2x2x1
jax: 0.10.0
libtpu: 0.0.40
codegen_flags: <defaults>
</compile_context>

<pallas_src>
import functools
from dataclasses import dataclass

import jax
import jax.numpy as jnp
import numpy as np
from jax.experimental import pallas as pl
from jax.experimental.pallas import tpu as pltpu


@dataclass
class CVRPConfig:
    latent_dimension: int = 32
    num_attention_heads: int = 4
    feedforward_dimension: int = 64
    num_transformer_blocks: int = 2
    dropout: float = 0.0          # eval mode -> dropout is identity
    use_rezero_transformer: bool = False


# ----------------------------- in-kernel helpers -----------------------------

def _layernorm(x, g, b, eps=1e-5):
    # matches torch.nn.LayerNorm (biased variance, eps inside rsqrt)
    mu = jnp.mean(x, axis=-1, keepdims=True)
    xc = x - mu
    var = jnp.mean(xc * xc, axis=-1, keepdims=True)
    return xc * jax.lax.rsqrt(var + eps) * g + b


def _erf(x):
    # Abramowitz & Stegun 7.1.26, |abs err| <= 1.5e-7.
    a1, a2, a3, a4, a5 = 0.254829592, -0.284496736, 1.421413741, -1.453152027, 1.061405429
    p = 0.3275911
    sgn = jnp.where(x < 0.0, -1.0, 1.0)
    ax = jnp.abs(x)
    t = pl.reciprocal(1.0 + p * ax, approx=True)          # EUP slot
    poly = ((((a5 * t + a4) * t + a3) * t + a2) * t + a1) * t
    return sgn * (1.0 - poly * jnp.exp(-ax * ax))


def _gelu_exact(x):
    return 0.5 * x * (1.0 + _erf(x * 0.7071067811865476))


# ----------------- fused (all layers) transformer encoder kernel --------------

def encoder_kernel(x_ref, bias_ref, ln1g_ref, ln1b_ref, wqkv_ref, bqkv_ref, wo_ref,
                   bo_ref, ln2g_ref, ln2b_ref, w1_ref, b1_ref, w2_ref, b2_ref, out_ref,
                   *, num_heads, num_layers, chunk_rows, num_chunks):
    D = x_ref.shape[-1]
    hd = D // num_heads
    mm_dtype = wqkv_ref.dtype     # bf16 MXU inputs (f32 accumulation) on v6e/v7x

    for c in range(num_chunks):                       # static unroll, <= 8 chunks
        r0 = c * chunk_rows
        x = x_ref[pl.ds(r0, chunk_rows), :].astype(jnp.float32)

        for l in range(num_layers):                   # static unroll, 2 layers
            # ---- pre-LN multi-head self-attention ----
            h = _layernorm(x, ln1g_ref[l], ln1b_ref[l]).astype(mm_dtype)
            qkv = jnp.dot(h, wqkv_ref[l],
                          preferred_element_type=jnp.float32) + bqkv_ref[l]
            q = qkv[:, 0 * D:1 * D].astype(mm_dtype)  # 1/sqrt(hd) already folded in
            k = qkv[:, 1 * D:2 * D].astype(mm_dtype)
            v = qkv[:, 2 * D:3 * D].astype(mm_dtype)
            wo_l = wo_ref[l]                          # (D, D)

            attn = None
            for hh in range(num_heads):
                sl = slice(hh * hd, (hh + 1) * hd)
                # packed scores over all sequences in the chunk: (Mc, hd) x (hd, Mc)
                s = jax.lax.dot_general(q[:, sl], k[:, sl], (((1,), (1,)), ((), ())),
                                        preferred_element_type=jnp.float32)
                s = s + bias_ref[...]                 # block-diagonal additive mask
                m = jnp.max(s, axis=-1, keepdims=True)
                e = jnp.exp(s - m)
                pr = e * pl.reciprocal(jnp.sum(e, axis=-1, keepdims=True), approx=True)
                oh = jnp.dot(pr.astype(mm_dtype), v[:, sl],
                             preferred_element_type=jnp.float32)        # (Mc, hd)
                # fuse the output projection per head -> no concat / lane reassembly
                hc = jnp.dot(oh.astype(mm_dtype), wo_l[sl, :],
                             preferred_element_type=jnp.float32)        # (Mc, D)
                attn = hc if attn is None else attn + hc
            x = x + attn + bo_ref[l]                  # residual 1 (+ out_proj bias)

            # ---- pre-LN feed-forward (linear -> exact-erf GELU -> linear) ----
            h2 = _layernorm(x, ln2g_ref[l], ln2b_ref[l]).astype(mm_dtype)
            f = jnp.dot(h2, w1_ref[l], preferred_element_type=jnp.float32) + b1_ref[l]
            f = _gelu_exact(f).astype(mm_dtype)
            f = jnp.dot(f, w2_ref[l], preferred_element_type=jnp.float32) + b2_ref[l]
            x = x + f                                 # residual 2

        out_ref[pl.ds(r0, chunk_rows), :] = x.astype(out_ref.dtype)


def encoder_forward_pallas(seq, enc, num_heads, *, max_chunk_rows=128,
                           target_chunks_per_block=8):
    """Run all transformer encoder layers in one fused pallas_call.

    seq: (B, N, D) activations.  enc: stacked layer params (leading dim L).
    """
    B, N, D = seq.shape
    L = enc['wqkv_t'].shape[0]
    assert D % num_heads == 0

    # --- packing: sequences per attention chunk (<=128 rows), chunks per DMA block ---
    seqs_per_chunk = max(1, min(B, max_chunk_rows // N))
    Mc = seqs_per_chunk * N                            # packed score block is (Mc, Mc)
    total_chunks = -(-B // seqs_per_chunk)

    chunks_per_block = min(target_chunks_per_block, total_chunks)
    if total_chunks >= 2:                              # keep >=2 grid blocks (v7x megacore)
        chunks_per_block = min(chunks_per_block, max(1, total_chunks // 2))
    num_blocks = -(-total_chunks // chunks_per_block)
    block_rows = chunks_per_block * Mc
    if num_blocks > 1 and block_rows % 8 != 0:         # sublane-tiling safety net
        chunks_per_block, num_blocks = total_chunks, 1
        block_rows = chunks_per_block * Mc

    Bp = num_blocks * chunks_per_block * seqs_per_chunk
    if Bp != B:
        # pad with zero sequences; the block-diagonal bias keeps them isolated and the
        # padded rows are sliced away below.
        seq = jnp.concatenate([seq, jnp.zeros((Bp - B, N, D), seq.dtype)], axis=0)
    xf = seq.reshape(Bp * N, D)                        # fold (batch, seq) -> rows

    # block-diagonal additive attention bias for one chunk (0 within a sequence,
    # -1e30 across sequences) -- precomputed once, VMEM-resident via constant index_map
    ids = np.arange(Mc) // N
    bias = jnp.asarray(np.where(ids[:, None] == ids[None, :], 0.0, -1e30),
                       dtype=jnp.float32)

    def wspec(arr):
        nd = arr.ndim
        return pl.BlockSpec(arr.shape, lambda i, _nd=nd: (0,) * _nd)

    weight_keys = ('ln1_g', 'ln1_b', 'wqkv_t', 'bqkv', 'wo_t', 'bo',
                   'ln2_g', 'ln2_b', 'w1_t', 'b1', 'w2_t', 'b2')
    weights = [enc[k] for k in weight_keys]

    kernel = functools.partial(encoder_kernel, num_heads=num_heads, num_layers=L,
                               chunk_rows=Mc, num_chunks=chunks_per_block)
    out = pl.pallas_call(
        kernel,
        out_shape=jax.ShapeDtypeStruct((Bp * N, D), seq.dtype),
        grid=(num_blocks,),
        in_specs=[pl.BlockSpec((block_rows, D), lambda i: (i, 0)),
                  pl.BlockSpec(bias.shape, lambda i: (0, 0))]
                 + [wspec(w) for w in weights],
        out_specs=pl.BlockSpec((block_rows, D), lambda i: (i, 0)),
        compiler_params=pltpu.CompilerParams(dimension_semantics=("parallel",)),
    )(xf, bias, *weights)
    return out.reshape(Bp, N, D)[:B]


# ------------------------------ parameters -----------------------------------

def _dense(key, shape, scale=0.1):
    return (scale * jax.random.normal(key, shape)).astype(jnp.float32)


def init_params(key, cfg: CVRPConfig):
    D, FF = cfg.latent_dimension, cfg.feedforward_dimension
    keys = iter(jax.random.split(key, 5 + 5 * cfg.num_transformer_blocks))
    params = {
        'emb_w': _dense(next(keys), (D, 4)),        # nn.Linear(4, D).weight
        'emb_b': _dense(next(keys), (D,)),          # nn.Linear(4, D).bias
        'marker_emb': _dense(next(keys), (2, D)),   # nn.Embedding(2, D).weight
        'pol_w': _dense(next(keys), (2, D)),        # nn.Linear(D, 2).weight
        'pol_b': _dense(next(keys), (2,)),          # nn.Linear(D, 2).bias
        'layers': [],
    }
    for _ in range(cfg.num_transformer_blocks):
        wqkv = _dense(next(keys), (3 * D, D))       # MHA in_proj_weight
        wo = _dense(next(keys), (D, D))             # MHA out_proj.weight
        w1 = _dense(next(keys), (FF, D))            # linear1.weight
        w2 = _dense(next(keys), (D, FF))            # linear2.weight
        bks = jax.random.split(next(keys), 4)
        params['layers'].append({
            'ln1_g': jnp.ones((1, D), jnp.float32),
            'ln1_b': jnp.zeros((1, D), jnp.float32),
            'ln2_g': jnp.ones((1, D), jnp.float32),
            'ln2_b': jnp.zeros((1, D), jnp.float32),
            'wqkv_t': wqkv.T, 'bqkv': _dense(bks[0], (1, 3 * D)),
            'wo_t': wo.T, 'bo': _dense(bks[1], (1, D)),
            'w1_t': w1.T, 'b1': _dense(bks[2], (1, FF)),
            'w2_t': w2.T, 'b2': _dense(bks[3], (1, D)),
        })
    return params


def prepare_encoder_params(params, num_heads, matmul_dtype=jnp.bfloat16):
    """Stack per-layer weights along a leading L axis, fold the 1/sqrt(hd) attention
    scale into the Q columns of the in-proj weight/bias, and pre-cast the matmul
    weights to the MXU input dtype (bf16) once."""
    layers = params['layers']
    enc = {k: jnp.stack([lp[k] for lp in layers])
           for k in ('ln1_g', 'ln1_b', 'wqkv_t', 'bqkv', 'wo_t', 'bo',
                     'ln2_g', 'ln2_b', 'w1_t', 'b1', 'w2_t', 'b2')}
    D = enc['wo_t'].shape[-1]
    hd = D // num_heads
    scale = 1.0 / float(np.sqrt(hd))
    qcols = jnp.concatenate([jnp.full((D,), scale, jnp.float32),
                             jnp.ones((2 * D,), jnp.float32)])
    enc['wqkv_t'] = enc['wqkv_t'] * qcols[None, None, :]
    enc['bqkv'] = enc['bqkv'] * qcols[None, None, :]
    for k in ('wqkv_t', 'wo_t', 'w1_t', 'w2_t'):      # bf16 MXU inputs, f32 accumulation
        enc[k] = enc[k].astype(matmul_dtype)
    return enc


# ------------------------------ full forward ----------------------------------

def _embed(params, x):
    nodes = x['nodes']                                   # (B, N, 2)
    B, N, _ = nodes.shape
    node_seq = jnp.concatenate(
        [nodes,
         x['demands'][:, :, None],                       # (B, N, 1)
         jnp.repeat(x['current_capacity'][:, None, :], N, axis=1)],  # (B, N, 1)
        axis=2)                                          # (B, N, 4)
    emb = node_seq @ params['emb_w'].T + params['emb_b']  # (B, N, D)
    depot_marker = params['marker_emb'][0]
    start_marker = params['marker_emb'][1]
    emb = emb.at[:, 0].add(depot_marker)
    emb = emb.at[:, :2].add(x['start_node_mask'][:, :, None] * start_marker[None, None, :])
    return emb


def _head(params, seq, action_mask):
    B = seq.shape[0]
    logits = seq @ params['pol_w'].T + params['pol_b']   # (B, N, 2)
    logits = logits.reshape(B, -1)[:, 2:]                # drop the depot's two logits
    return jnp.where(action_mask, -jnp.inf, logits)      # logits[action_mask] = -inf


def bq_policy_forward(params, enc_params, x, cfg: CVRPConfig, *,
                      max_chunk_rows=128, target_chunks_per_block=8):
    seq = _embed(params, x)
    seq = encoder_forward_pallas(seq, enc_params, cfg.num_attention_heads,
                                 max_chunk_rows=max_chunk_rows,
                                 target_chunks_per_block=target_chunks_per_block)
    return _head(params, seq, x['action_mask'])


# pure-JAX f32 reference (exact erf GELU, per-layer weights) for validation
def _transformer_block_ref(x, p, num_heads):
    def ln(t, g, b):
        mu = t.mean(-1, keepdims=True)
        tc = t - mu
        var = (tc * tc).mean(-1, keepdims=True)
        return tc * jax.lax.rsqrt(var + 1e-5) * g + b

    B, N, D = x.shape
    hd = D // num_heads
    h = ln(x, p['ln1_g'][0], p['ln1_b'][0])
    qkv = h @ p['wqkv_t'] + p['bqkv'][0]
    q, k, v = jnp.split(qkv, 3, axis=-1)
    sh = lambda t: t.reshape(B, N, num_heads, hd).transpose(0, 2, 1, 3)
    q, k, v = sh(q), sh(k), sh(v)
    s = jnp.einsum('bhqd,bhkd->bhqk', q, k) / np.sqrt(hd)
    a = jax.nn.softmax(s, axis=-1)
    o = jnp.einsum('bhqk,bhkd->bhqd', a, v).transpose(0, 2, 1, 3).reshape(B, N, D)
    x = x + (o @ p['wo_t'] + p['bo'][0])
    h2 = ln(x, p['ln2_g'][0], p['ln2_b'][0])
    f = jax.nn.gelu(h2 @ p['w1_t'] + p['b1'][0], approximate=False)
    return x + (f @ p['w2_t'] + p['b2'][0])


def bq_policy_forward_ref(params, x, cfg: CVRPConfig):
    seq = _embed(params, x)
    for lp in params['layers']:
        seq = _transformer_block_ref(seq, lp, cfg.num_attention_heads)
    return _head(params, seq, x['action_mask'])


# ----------------------------------- main -------------------------------------

def _make_inputs(key, B, N):
    kn, kd, kc, ka, km = jax.random.split(key, 5)
    return {
        'nodes': jax.random.uniform(kn, (B, N, 2), jnp.float32),
        'demands': jax.random.uniform(kd, (B, N), jnp.float32),
        'current_capacity': jax.random.uniform(kc, (B, 1), jnp.float32),
        'start_node_mask': jax.random.bernoulli(km, 0.5, (B, 2)).astype(jnp.float32),
        'action_mask': jax.random.bernoulli(ka, 0.25, (B, 2 * N - 2)),
    }


if __name__ == "__main__":
    cfg = CVRPConfig(latent_dimension=32, num_attention_heads=4,
                     feedforward_dimension=64, num_transformer_blocks=2)
    key = jax.random.PRNGKey(0)
    kp, kx1, kx2, kx3 = jax.random.split(key, 4)
    params = init_params(kp, cfg)
    enc = prepare_encoder_params(params, cfg.num_attention_heads)

    # bf16 MXU inputs (per perf review) + approx reciprocal + erf polynomial deviate
    # from the exact-f32 reference by ~1e-3..1e-2; tolerance is set accordingly.
    RTOL = ATOL = 2e-2
    N = 8

    # 1) primary check: B=2, N=8 -> single chunk, single grid block, no padding.
    x1 = _make_inputs(kx1, 2, N)
    out1 = jax.block_until_ready(bq_policy_forward(params, enc, x1, cfg))
    ref1 = jax.block_until_ready(bq_policy_forward_ref(params, x1, cfg))
    assert out1.shape == (2, 2 * N - 2), out1.shape
    np.testing.assert_allclose(np.asarray(out1), np.asarray(ref1), rtol=RTOL, atol=ATOL)

    # 2) B=5 with a tiny chunk budget -> multi-block grid, batch padding, and the
    #    block-diagonal additive-bias mask all exercised.
    x2 = _make_inputs(kx2, 5, N)
    out2 = jax.block_until_ready(
        bq_policy_forward(params, enc, x2, cfg, max_chunk_rows=16))
    ref2 = jax.block_until_ready(bq_policy_forward_ref(params, x2, cfg))
    assert out2.shape == (5, 2 * N - 2), out2.shape
    np.testing.assert_allclose(np.asarray(out2), np.asarray(ref2), rtol=RTOL, atol=ATOL)

    # 3) B=64 -> the production path: 128-row packed chunks (16 sequences each),
    #    2 chunks per grid block, 2 grid blocks ("parallel" across TCs on v7x).
    x3 = _make_inputs(kx3, 64, N)
    out3 = jax.block_until_ready(bq_policy_forward(params, enc, x3, cfg))
    ref3 = jax.block_until_ready(bq_policy_forward_ref(params, x3, cfg))
    assert out3.shape == (64, 2 * N - 2), out3.shape
    np.testing.assert_allclose(np.asarray(out3), np.asarray(ref3), rtol=RTOL, atol=ATOL)

    print("KERNEL_OK")
</pallas_src>

<mosaic_0001>
module attributes {stable_mosaic.version = 11 : i64} {
  func.func @encoder_kernel(%arg0: i32, %arg1: memref<16x32xf32, #tpu.memory_space<vmem>>, %arg2: memref<16x16xf32, #tpu.memory_space<vmem>>, %arg3: memref<2x1x32xf32, #tpu.memory_space<vmem>>, %arg4: memref<2x1x32xf32, #tpu.memory_space<vmem>>, %arg5: memref<2x32x96xbf16, #tpu.memory_space<vmem>>, %arg6: memref<2x1x96xf32, #tpu.memory_space<vmem>>, %arg7: memref<2x32x32xbf16, #tpu.memory_space<vmem>>, %arg8: memref<2x1x32xf32, #tpu.memory_space<vmem>>, %arg9: memref<2x1x32xf32, #tpu.memory_space<vmem>>, %arg10: memref<2x1x32xf32, #tpu.memory_space<vmem>>, %arg11: memref<2x32x64xbf16, #tpu.memory_space<vmem>>, %arg12: memref<2x1x64xf32, #tpu.memory_space<vmem>>, %arg13: memref<2x64x32xbf16, #tpu.memory_space<vmem>>, %arg14: memref<2x1x32xf32, #tpu.memory_space<vmem>>, %arg15: memref<16x32xf32, #tpu.memory_space<vmem>>) attributes {dimension_semantics = [#tpu.dimension_semantics<parallel>], iteration_bounds = array<i64: 1>, scalar_prefetch = 0 : i64, scratch_operands = 0 : i64, tpu.core_type = #tpu.core_type<tc>, window_params = [{transform_indices = @transform_0, window_bounds = array<i64: 16, 32>}, {pipeline_mode = #tpu.pipeline_mode<synchronous>, transform_indices = @transform_1, window_bounds = array<i64: 16, 16>}, {pipeline_mode = #tpu.pipeline_mode<synchronous>, transform_indices = @transform_2, window_bounds = array<i64: 2, 1, 32>}, {pipeline_mode = #tpu.pipeline_mode<synchronous>, transform_indices = @transform_3, window_bounds = array<i64: 2, 1, 32>}, {pipeline_mode = #tpu.pipeline_mode<synchronous>, transform_indices = @transform_4, window_bounds = array<i64: 2, 32, 96>}, {pipeline_mode = #tpu.pipeline_mode<synchronous>, transform_indices = @transform_5, window_bounds = array<i64: 2, 1, 96>}, {pipeline_mode = #tpu.pipeline_mode<synchronous>, transform_indices = @transform_6, window_bounds = array<i64: 2, 32, 32>}, {pipeline_mode = #tpu.pipeline_mode<synchronous>, transform_indices = @transform_7, window_bounds = array<i64: 2, 1, 32>}, {pipeline_mode = #tpu.pipeline_mode<synchronous>, transform_indices = @transform_8, window_bounds = array<i64: 2, 1, 32>}, {pipeline_mode = #tpu.pipeline_mode<synchronous>, transform_indices = @transform_9, window_bounds = array<i64: 2, 1, 32>}, {pipeline_mode = #tpu.pipeline_mode<synchronous>, transform_indices = @transform_10, window_bounds = array<i64: 2, 32, 64>}, {pipeline_mode = #tpu.pipeline_mode<synchronous>, transform_indices = @transform_11, window_bounds = array<i64: 2, 1, 64>}, {pipeline_mode = #tpu.pipeline_mode<synchronous>, transform_indices = @transform_12, window_bounds = array<i64: 2, 64, 32>}, {pipeline_mode = #tpu.pipeline_mode<synchronous>, transform_indices = @transform_13, window_bounds = array<i64: 2, 1, 32>}, {transform_indices = @transform_14, window_bounds = array<i64: 16, 32>}]} {
    %c0 = arith.constant 0 : index
    %c0_0 = arith.constant 0 : index
    %0 = vector.load %arg1[%c0, %c0_0] : memref<16x32xf32, #tpu.memory_space<vmem>>, vector<16x32xf32>
    %c0_1 = arith.constant 0 : index
    %c0_2 = arith.constant 0 : index
    %c0_3 = arith.constant 0 : index
    %1 = vector.load %arg3[%c0_1, %c0_2, %c0_3] : memref<2x1x32xf32, #tpu.memory_space<vmem>>, vector<1x1x32xf32>
    %2 = vector.shape_cast %1 : vector<1x1x32xf32> to vector<1x32xf32>
    %c0_4 = arith.constant 0 : index
    %c0_5 = arith.constant 0 : index
    %c0_6 = arith.constant 0 : index
    %3 = vector.load %arg4[%c0_4, %c0_5, %c0_6] : memref<2x1x32xf32, #tpu.memory_space<vmem>>, vector<1x1x32xf32>
    %4 = vector.shape_cast %3 : vector<1x1x32xf32> to vector<1x32xf32>
    %cst = arith.constant dense<0.000000e+00> : vector<16xf32>
    %5 = vector.multi_reduction <add>, %0, %cst [1] : vector<16x32xf32> to vector<16xf32>
    %6 = vector.shape_cast %5 : vector<16xf32> to vector<16x1xf32>
    %cst_7 = arith.constant 3.200000e+01 : f32
    %7 = vector.broadcast %cst_7 : f32 to vector<16x1xf32>
    %8 = arith.divf %6, %7 : vector<16x1xf32>
    %9 = vector.broadcast %8 : vector<16x1xf32> to vector<16x32xf32>
    %10 = arith.subf %0, %9 : vector<16x32xf32>
    %11 = arith.mulf %10, %10 : vector<16x32xf32>
    %cst_8 = arith.constant dense<0.000000e+00> : vector<16xf32>
    %12 = vector.multi_reduction <add>, %11, %cst_8 [1] : vector<16x32xf32> to vector<16xf32>
    %13 = vector.shape_cast %12 : vector<16xf32> to vector<16x1xf32>
    %cst_9 = arith.constant 3.200000e+01 : f32
    %14 = vector.broadcast %cst_9 : f32 to vector<16x1xf32>
    %15 = arith.divf %13, %14 : vector<16x1xf32>
    %cst_10 = arith.constant 9.99999974E-6 : f32
    %16 = vector.broadcast %cst_10 : f32 to vector<16x1xf32>
    %17 = arith.addf %15, %16 : vector<16x1xf32>
    %18 = math.rsqrt %17 : vector<16x1xf32>
    %19 = vector.broadcast %18 : vector<16x1xf32> to vector<16x32xf32>
    %20 = arith.mulf %10, %19 : vector<16x32xf32>
    %21 = vector.broadcast %2 : vector<1x32xf32> to vector<16x32xf32>
    %22 = arith.mulf %20, %21 : vector<16x32xf32>
    %23 = vector.broadcast %4 : vector<1x32xf32> to vector<16x32xf32>
    %24 = arith.addf %22, %23 : vector<16x32xf32>
    %25 = arith.truncf %24 : vector<16x32xf32> to vector<16x32xbf16>
    %c0_11 = arith.constant 0 : index
    %c0_12 = arith.constant 0 : index
    %c0_13 = arith.constant 0 : index
    %26 = vector.load %arg5[%c0_11, %c0_12, %c0_13] : memref<2x32x96xbf16, #tpu.memory_space<vmem>>, vector<1x32x96xbf16>
    %27 = vector.shape_cast %26 : vector<1x32x96xbf16> to vector<32x96xbf16>
    %cst_14 = arith.constant dense<0.000000e+00> : vector<16x96xf32>
    %28 = tpu.matmul %25, %27, %cst_14 {dimension_numbers = #tpu.dot_dimension_numbers<[1], [0], [0], [1], [0, 0, 1, 1], [], []>} : vector<16x32xbf16>, vector<32x96xbf16>, vector<16x96xf32> -> vector<16x96xf32>
    %c0_15 = arith.constant 0 : index
    %c0_16 = arith.constant 0 : index
    %c0_17 = arith.constant 0 : index
    %29 = vector.load %arg6[%c0_15, %c0_16, %c0_17] : memref<2x1x96xf32, #tpu.memory_space<vmem>>, vector<1x1x96xf32>
    %30 = vector.shape_cast %29 : vector<1x1x96xf32> to vector<1x96xf32>
    %31 = vector.broadcast %30 : vector<1x96xf32> to vector<16x96xf32>
    %32 = arith.addf %28, %31 : vector<16x96xf32>
    %33 = vector.extract_strided_slice %32 {offsets = [0, 0], sizes = [16, 32], strides = [1, 1]} : vector<16x96xf32> to vector<16x32xf32>
    %34 = arith.truncf %33 : vector<16x32xf32> to vector<16x32xbf16>
    %35 = vector.extract_strided_slice %32 {offsets = [0, 32], sizes = [16, 32], strides = [1, 1]} : vector<16x96xf32> to vector<16x32xf32>
    %36 = arith.truncf %35 : vector<16x32xf32> to vector<16x32xbf16>
    %37 = vector.extract_strided_slice %32 {offsets = [0, 64], sizes = [16, 32], strides = [1, 1]} : vector<16x96xf32> to vector<16x32xf32>
    %38 = arith.truncf %37 : vector<16x32xf32> to vector<16x32xbf16>
    %c0_18 = arith.constant 0 : index
    %c0_19 = arith.constant 0 : index
    %c0_20 = arith.constant 0 : index
    %39 = vector.load %arg7[%c0_18, %c0_19, %c0_20] : memref<2x32x32xbf16, #tpu.memory_space<vmem>>, vector<1x32x32xbf16>
    %40 = vector.shape_cast %39 : vector<1x32x32xbf16> to vector<32x32xbf16>
    %41 = vector.extract_strided_slice %34 {offsets = [0, 0], sizes = [16, 8], strides = [1, 1]} : vector<16x32xbf16> to vector<16x8xbf16>
    %42 = vector.extract_strided_slice %36 {offsets = [0, 0], sizes = [16, 8], strides = [1, 1]} : vector<16x32xbf16> to vector<16x8xbf16>
    %cst_21 = arith.constant dense<0.000000e+00> : vector<16x16xf32>
    %43 = tpu.matmul %41, %42, %cst_21 {dimension_numbers = #tpu.dot_dimension_numbers<[1], [1], [0], [0], [0, 0, 1, 0], [], []>} : vector<16x8xbf16>, vector<16x8xbf16>, vector<16x16xf32> -> vector<16x16xf32>
    %c0_22 = arith.constant 0 : index
    %c0_23 = arith.constant 0 : index
    %44 = vector.load %arg2[%c0_22, %c0_23] : memref<16x16xf32, #tpu.memory_space<vmem>>, vector<16x16xf32>
    %45 = arith.addf %43, %44 : vector<16x16xf32>
    %cst_24 = arith.constant dense<0xFF800000> : vector<16xf32>
    %46 = vector.multi_reduction <maximumf>, %45, %cst_24 [1] : vector<16x16xf32> to vector<16xf32>
    %47 = vector.shape_cast %46 : vector<16xf32> to vector<16x1xf32>
    %48 = vector.broadcast %47 : vector<16x1xf32> to vector<16x16xf32>
    %49 = arith.subf %45, %48 : vector<16x16xf32>
    %50 = math.exp %49 : vector<16x16xf32>
    %cst_25 = arith.constant dense<0.000000e+00> : vector<16xf32>
    %51 = vector.multi_reduction <add>, %50, %cst_25 [1] : vector<16x16xf32> to vector<16xf32>
    %52 = vector.shape_cast %51 : vector<16xf32> to vector<16x1xf32>
    %53 = tpu.reciprocal %52 {approx = true} : vector<16x1xf32> -> vector<16x1xf32>
    %54 = vector.broadcast %53 : vector<16x1xf32> to vector<16x16xf32>
    %55 = arith.mulf %50, %54 : vector<16x16xf32>
    %56 = arith.truncf %55 : vector<16x16xf32> to vector<16x16xbf16>
    %57 = vector.extract_strided_slice %38 {offsets = [0, 0], sizes = [16, 8], strides = [1, 1]} : vector<16x32xbf16> to vector<16x8xbf16>
    %cst_26 = arith.constant dense<0.000000e+00> : vector<16x8xf32>
    %58 = tpu.matmul %56, %57, %cst_26 {dimension_numbers = #tpu.dot_dimension_numbers<[1], [0], [0], [1], [0, 0, 1, 1], [], []>} : vector<16x16xbf16>, vector<16x8xbf16>, vector<16x8xf32> -> vector<16x8xf32>
    %59 = arith.truncf %58 : vector<16x8xf32> to vector<16x8xbf16>
    %60 = vector.extract_strided_slice %40 {offsets = [0, 0], sizes = [8, 32], strides = [1, 1]} : vector<32x32xbf16> to vector<8x32xbf16>
    %cst_27 = arith.constant dense<0.000000e+00> : vector<16x32xf32>
    %61 = tpu.matmul %59, %60, %cst_27 {dimension_numbers = #tpu.dot_dimension_numbers<[1], [0], [0], [1], [0, 0, 1, 1], [], []>} : vector<16x8xbf16>, vector<8x32xbf16>, vector<16x32xf32> -> vector<16x32xf32>
    %62 = vector.extract_strided_slice %34 {offsets = [0, 8], sizes = [16, 8], strides = [1, 1]} : vector<16x32xbf16> to vector<16x8xbf16>
    %63 = vector.extract_strided_slice %36 {offsets = [0, 8], sizes = [16, 8], strides = [1, 1]} : vector<16x32xbf16> to vector<16x8xbf16>
    %cst_28 = arith.constant dense<0.000000e+00> : vector<16x16xf32>
    %64 = tpu.matmul %62, %63, %cst_28 {dimension_numbers = #tpu.dot_dimension_numbers<[1], [1], [0], [0], [0, 0, 1, 0], [], []>} : vector<16x8xbf16>, vector<16x8xbf16>, vector<16x16xf32> -> vector<16x16xf32>
    %c0_29 = arith.constant 0 : index
    %c0_30 = arith.constant 0 : index
    %65 = vector.load %arg2[%c0_29, %c0_30] : memref<16x16xf32, #tpu.memory_space<vmem>>, vector<16x16xf32>
    %66 = arith.addf %64, %65 : vector<16x16xf32>
    %cst_31 = arith.constant dense<0xFF800000> : vector<16xf32>
    %67 = vector.multi_reduction <maximumf>, %66, %cst_31 [1] : vector<16x16xf32> to vector<16xf32>
    %68 = vector.shape_cast %67 : vector<16xf32> to vector<16x1xf32>
    %69 = vector.broadcast %68 : vector<16x1xf32> to vector<16x16xf32>
    %70 = arith.subf %66, %69 : vector<16x16xf32>
    %71 = math.exp %70 : vector<16x16xf32>
    %cst_32 = arith.constant dense<0.000000e+00> : vector<16xf32>
    %72 = vector.multi_reduction <add>, %71, %cst_32 [1] : vector<16x16xf32> to vector<16xf32>
    %73 = vector.shape_cast %72 : vector<16xf32> to vector<16x1xf32>
    %74 = tpu.reciprocal %73 {approx = true} : vector<16x1xf32> -> vector<16x1xf32>
    %75 = vector.broadcast %74 : vector<16x1xf32> to vector<16x16xf32>
    %76 = arith.mulf %71, %75 : vector<16x16xf32>
    %77 = arith.truncf %76 : vector<16x16xf32> to vector<16x16xbf16>
    %78 = vector.extract_strided_slice %38 {offsets = [0, 8], sizes = [16, 8], strides = [1, 1]} : vector<16x32xbf16> to vector<16x8xbf16>
    %cst_33 = arith.constant dense<0.000000e+00> : vector<16x8xf32>
    %79 = tpu.matmul %77, %78, %cst_33 {dimension_numbers = #tpu.dot_dimension_numbers<[1], [0], [0], [1], [0, 0, 1, 1], [], []>} : vector<16x16xbf16>, vector<16x8xbf16>, vector<16x8xf32> -> vector<16x8xf32>
    %80 = arith.truncf %79 : vector<16x8xf32> to vector<16x8xbf16>
    %81 = vector.extract_strided_slice %40 {offsets = [8, 0], sizes = [8, 32], strides = [1, 1]} : vector<32x32xbf16> to vector<8x32xbf16>
    %cst_34 = arith.constant dense<0.000000e+00> : vector<16x32xf32>
    %82 = tpu.matmul %80, %81, %cst_34 {dimension_numbers = #tpu.dot_dimension_numbers<[1], [0], [0], [1], [0, 0, 1, 1], [], []>} : vector<16x8xbf16>, vector<8x32xbf16>, vector<16x32xf32> -> vector<16x32xf32>
    %83 = arith.addf %61, %82 : vector<16x32xf32>
    %84 = vector.extract_strided_slice %34 {offsets = [0, 16], sizes = [16, 8], strides = [1, 1]} : vector<16x32xbf16> to vector<16x8xbf16>
    %85 = vector.extract_strided_slice %36 {offsets = [0, 16], sizes = [16, 8], strides = [1, 1]} : vector<16x32xbf16> to vector<16x8xbf16>
    %cst_35 = arith.constant dense<0.000000e+00> : vector<16x16xf32>
    %86 = tpu.matmul %84, %85, %cst_35 {dimension_numbers = #tpu.dot_dimension_numbers<[1], [1], [0], [0], [0, 0, 1, 0], [], []>} : vector<16x8xbf16>, vector<16x8xbf16>, vector<16x16xf32> -> vector<16x16xf32>
    %c0_36 = arith.constant 0 : index
    %c0_37 = arith.constant 0 : index
    %87 = vector.load %arg2[%c0_36, %c0_37] : memref<16x16xf32, #tpu.memory_space<vmem>>, vector<16x16xf32>
    %88 = arith.addf %86, %87 : vector<16x16xf32>
    %cst_38 = arith.constant dense<0xFF800000> : vector<16xf32>
    %89 = vector.multi_reduction <maximumf>, %88, %cst_38 [1] : vector<16x16xf32> to vector<16xf32>
    %90 = vector.shape_cast %89 : vector<16xf32> to vector<16x1xf32>
    %91 = vector.broadcast %90 : vector<16x1xf32> to vector<16x16xf32>
    %92 = arith.subf %88, %91 : vector<16x16xf32>
    %93 = math.exp %92 : vector<16x16xf32>
    %cst_39 = arith.constant dense<0.000000e+00> : vector<16xf32>
    %94 = vector.multi_reduction <add>, %93, %cst_39 [1] : vector<16x16xf32> to vector<16xf32>
    %95 = vector.shape_cast %94 : vector<16xf32> to vector<16x1xf32>
    %96 = tpu.reciprocal %95 {approx = true} : vector<16x1xf32> -> vector<16x1xf32>
    %97 = vector.broadcast %96 : vector<16x1xf32> to vector<16x16xf32>
    %98 = arith.mulf %93, %97 : vector<16x16xf32>
    %99 = arith.truncf %98 : vector<16x16xf32> to vector<16x16xbf16>
    %100 = vector.extract_strided_slice %38 {offsets = [0, 16], sizes = [16, 8], strides = [1, 1]} : vector<16x32xbf16> to vector<16x8xbf16>
    %cst_40 = arith.constant dense<0.000000e+00> : vector<16x8xf32>
    %101 = tpu.matmul %99, %100, %cst_40 {dimension_numbers = #tpu.dot_dimension_numbers<[1], [0], [0], [1], [0, 0, 1, 1], [], []>} : vector<16x16xbf16>, vector<16x8xbf16>, vector<16x8xf32> -> vector<16x8xf32>
    %102 = arith.truncf %101 : vector<16x8xf32> to vector<16x8xbf16>
    %103 = vector.extract_strided_slice %40 {offsets = [16, 0], sizes = [8, 32], strides = [1, 1]} : vector<32x32xbf16> to vector<8x32xbf16>
    %cst_41 = arith.constant dense<0.000000e+00> : vector<16x32xf32>
    %104 = tpu.matmul %102, %103, %cst_41 {dimension_numbers = #tpu.dot_dimension_numbers<[1], [0], [0], [1], [0, 0, 1, 1], [], []>} : vector<16x8xbf16>, vector<8x32xbf16>, vector<16x32xf32> -> vector<16x32xf32>
    %105 = arith.addf %83, %104 : vector<16x32xf32>
    %106 = vector.extract_strided_slice %34 {offsets = [0, 24], sizes = [16, 8], strides = [1, 1]} : vector<16x32xbf16> to vector<16x8xbf16>
    %107 = vector.extract_strided_slice %36 {offsets = [0, 24], sizes = [16, 8], strides = [1, 1]} : vector<16x32xbf16> to vector<16x8xbf16>
    %cst_42 = arith.constant dense<0.000000e+00> : vector<16x16xf32>
    %108 = tpu.matmul %106, %107, %cst_42 {dimension_numbers = #tpu.dot_dimension_numbers<[1], [1], [0], [0], [0, 0, 1, 0], [], []>} : vector<16x8xbf16>, vector<16x8xbf16>, vector<16x16xf32> -> vector<16x16xf32>
    %c0_43 = arith.constant 0 : index
    %c0_44 = arith.constant 0 : index
    %109 = vector.load %arg2[%c0_43, %c0_44] : memref<16x16xf32, #tpu.memory_space<vmem>>, vector<16x16xf32>
    %110 = arith.addf %108, %109 : vector<16x16xf32>
    %cst_45 = arith.constant dense<0xFF800000> : vector<16xf32>
    %111 = vector.multi_reduction <maximumf>, %110, %cst_45 [1] : vector<16x16xf32> to vector<16xf32>
    %112 = vector.shape_cast %111 : vector<16xf32> to vector<16x1xf32>
    %113 = vector.broadcast %112 : vector<16x1xf32> to vector<16x16xf32>
    %114 = arith.subf %110, %113 : vector<16x16xf32>
    %115 = math.exp %114 : vector<16x16xf32>
    %cst_46 = arith.constant dense<0.000000e+00> : vector<16xf32>
    %116 = vector.multi_reduction <add>, %115, %cst_46 [1] : vector<16x16xf32> to vector<16xf32>
    %117 = vector.shape_cast %116 : vector<16xf32> to vector<16x1xf32>
    %118 = tpu.reciprocal %117 {approx = true} : vector<16x1xf32> -> vector<16x1xf32>
    %119 = vector.broadcast %118 : vector<16x1xf32> to vector<16x16xf32>
    %120 = arith.mulf %115, %119 : vector<16x16xf32>
    %121 = arith.truncf %120 : vector<16x16xf32> to vector<16x16xbf16>
    %122 = vector.extract_strided_slice %38 {offsets = [0, 24], sizes = [16, 8], strides = [1, 1]} : vector<16x32xbf16> to vector<16x8xbf16>
    %cst_47 = arith.constant dense<0.000000e+00> : vector<16x8xf32>
    %123 = tpu.matmul %121, %122, %cst_47 {dimension_numbers = #tpu.dot_dimension_numbers<[1], [0], [0], [1], [0, 0, 1, 1], [], []>} : vector<16x16xbf16>, vector<16x8xbf16>, vector<16x8xf32> -> vector<16x8xf32>
    %124 = arith.truncf %123 : vector<16x8xf32> to vector<16x8xbf16>
    %125 = vector.extract_strided_slice %40 {offsets = [24, 0], sizes = [8, 32], strides = [1, 1]} : vector<32x32xbf16> to vector<8x32xbf16>
    %cst_48 = arith.constant dense<0.000000e+00> : vector<16x32xf32>
    %126 = tpu.matmul %124, %125, %cst_48 {dimension_numbers = #tpu.dot_dimension_numbers<[1], [0], [0], [1], [0, 0, 1, 1], [], []>} : vector<16x8xbf16>, vector<8x32xbf16>, vector<16x32xf32> -> vector<16x32xf32>
    %127 = arith.addf %105, %126 : vector<16x32xf32>
    %128 = arith.addf %0, %127 : vector<16x32xf32>
    %c0_49 = arith.constant 0 : index
    %c0_50 = arith.constant 0 : index
    %c0_51 = arith.constant 0 : index
    %129 = vector.load %arg8[%c0_49, %c0_50, %c0_51] : memref<2x1x32xf32, #tpu.memory_space<vmem>>, vector<1x1x32xf32>
    %130 = vector.shape_cast %129 : vector<1x1x32xf32> to vector<1x32xf32>
    %131 = vector.broadcast %130 : vector<1x32xf32> to vector<16x32xf32>
    %132 = arith.addf %128, %131 : vector<16x32xf32>
    %c0_52 = arith.constant 0 : index
    %c0_53 = arith.constant 0 : index
    %c0_54 = arith.constant 0 : index
    %133 = vector.load %arg9[%c0_52, %c0_53, %c0_54] : memref<2x1x32xf32, #tpu.memory_space<vmem>>, vector<1x1x32xf32>
    %134 = vector.shape_cast %133 : vector<1x1x32xf32> to vector<1x32xf32>
    %c0_55 = arith.constant 0 : index
    %c0_56 = arith.constant 0 : index
    %c0_57 = arith.constant 0 : index
    %135 = vector.load %arg10[%c0_55, %c0_56, %c0_57] : memref<2x1x32xf32, #tpu.memory_space<vmem>>, vector<1x1x32xf32>
    %136 = vector.shape_cast %135 : vector<1x1x32xf32> to vector<1x32xf32>
    %cst_58 = arith.constant dense<0.000000e+00> : vector<16xf32>
    %137 = vector.multi_reduction <add>, %132, %cst_58 [1] : vector<16x32xf32> to vector<16xf32>
    %138 = vector.shape_cast %137 : vector<16xf32> to vector<16x1xf32>
    %cst_59 = arith.constant 3.200000e+01 : f32
    %139 = vector.broadcast %cst_59 : f32 to vector<16x1xf32>
    %140 = arith.divf %138, %139 : vector<16x1xf32>
    %141 = vector.broadcast %140 : vector<16x1xf32> to vector<16x32xf32>
    %142 = arith.subf %132, %141 : vector<16x32xf32>
    %143 = arith.mulf %142, %142 : vector<16x32xf32>
    %cst_60 = arith.constant dense<0.000000e+00> : vector<16xf32>
    %144 = vector.multi_reduction <add>, %143, %cst_60 [1] : vector<16x32xf32> to vector<16xf32>
    %145 = vector.shape_cast %144 : vector<16xf32> to vector<16x1xf32>
    %cst_61 = arith.constant 3.200000e+01 : f32
    %146 = vector.broadcast %cst_61 : f32 to vector<16x1xf32>
    %147 = arith.divf %145, %146 : vector<16x1xf32>
    %cst_62 = arith.constant 9.99999974E-6 : f32
    %148 = vector.broadcast %cst_62 : f32 to vector<16x1xf32>
    %149 = arith.addf %147, %148 : vector<16x1xf32>
    %150 = math.rsqrt %149 : vector<16x1xf32>
    %151 = vector.broadcast %150 : vector<16x1xf32> to vector<16x32xf32>
    %152 = arith.mulf %142, %151 : vector<16x32xf32>
    %153 = vector.broadcast %134 : vector<1x32xf32> to vector<16x32xf32>
    %154 = arith.mulf %152, %153 : vector<16x32xf32>
    %155 = vector.broadcast %136 : vector<1x32xf32> to vector<16x32xf32>
    %156 = arith.addf %154, %155 : vector<16x32xf32>
    %157 = arith.truncf %156 : vector<16x32xf32> to vector<16x32xbf16>
    %c0_63 = arith.constant 0 : index
    %c0_64 = arith.constant 0 : index
    %c0_65 = arith.constant 0 : index
    %158 = vector.load %arg11[%c0_63, %c0_64, %c0_65] : memref<2x32x64xbf16, #tpu.memory_space<vmem>>, vector<1x32x64xbf16>
    %159 = vector.shape_cast %158 : vector<1x32x64xbf16> to vector<32x64xbf16>
    %cst_66 = arith.constant dense<0.000000e+00> : vector<16x64xf32>
    %160 = tpu.matmul %157, %159, %cst_66 {dimension_numbers = #tpu.dot_dimension_numbers<[1], [0], [0], [1], [0, 0, 1, 1], [], []>} : vector<16x32xbf16>, vector<32x64xbf16>, vector<16x64xf32> -> vector<16x64xf32>
    %c0_67 = arith.constant 0 : index
    %c0_68 = arith.constant 0 : index
    %c0_69 = arith.constant 0 : index
    %161 = vector.load %arg12[%c0_67, %c0_68, %c0_69] : memref<2x1x64xf32, #tpu.memory_space<vmem>>, vector<1x1x64xf32>
    %162 = vector.shape_cast %161 : vector<1x1x64xf32> to vector<1x64xf32>
    %163 = vector.broadcast %162 : vector<1x64xf32> to vector<16x64xf32>
    %164 = arith.addf %160, %163 : vector<16x64xf32>
    %cst_70 = arith.constant 5.000000e-01 : f32
    %165 = vector.broadcast %cst_70 : f32 to vector<16x64xf32>
    %166 = arith.mulf %165, %164 : vector<16x64xf32>
    %cst_71 = arith.constant 0.707106769 : f32
    %167 = vector.broadcast %cst_71 : f32 to vector<16x64xf32>
    %168 = arith.mulf %164, %167 : vector<16x64xf32>
    %cst_72 = arith.constant 0.000000e+00 : f32
    %169 = vector.broadcast %cst_72 : f32 to vector<16x64xf32>
    %170 = arith.cmpf olt, %168, %169 : vector<16x64xf32>
    %cst_73 = arith.constant -1.000000e+00 : f32
    %cst_74 = arith.constant 1.000000e+00 : f32
    %171 = vector.broadcast %cst_73 : f32 to vector<16x64xf32>
    %172 = vector.broadcast %cst_74 : f32 to vector<16x64xf32>
    %173 = arith.select %170, %171, %172 : vector<16x64xi1>, vector<16x64xf32>
    %174 = math.absf %168 : vector<16x64xf32>
    %cst_75 = arith.constant 0.327591091 : f32
    %175 = vector.broadcast %cst_75 : f32 to vector<16x64xf32>
    %176 = arith.mulf %175, %174 : vector<16x64xf32>
    %cst_76 = arith.constant 1.000000e+00 : f32
    %177 = vector.broadcast %cst_76 : f32 to vector<16x64xf32>
    %178 = arith.addf %177, %176 : vector<16x64xf32>
    %179 = tpu.reciprocal %178 {approx = true} : vector<16x64xf32> -> vector<16x64xf32>
    %cst_77 = arith.constant 1.06140542 : f32
    %180 = vector.broadcast %cst_77 : f32 to vector<16x64xf32>
    %181 = arith.mulf %180, %179 : vector<16x64xf32>
    %cst_78 = arith.constant -1.45315206 : f32
    %182 = vector.broadcast %cst_78 : f32 to vector<16x64xf32>
    %183 = arith.addf %181, %182 : vector<16x64xf32>
    %184 = arith.mulf %183, %179 : vector<16x64xf32>
    %cst_79 = arith.constant 1.42141378 : f32
    %185 = vector.broadcast %cst_79 : f32 to vector<16x64xf32>
    %186 = arith.addf %184, %185 : vector<16x64xf32>
    %187 = arith.mulf %186, %179 : vector<16x64xf32>
    %cst_80 = arith.constant -0.284496725 : f32
    %188 = vector.broadcast %cst_80 : f32 to vector<16x64xf32>
    %189 = arith.addf %187, %188 : vector<16x64xf32>
    %190 = arith.mulf %189, %179 : vector<16x64xf32>
    %cst_81 = arith.constant 0.254829586 : f32
    %191 = vector.broadcast %cst_81 : f32 to vector<16x64xf32>
    %192 = arith.addf %190, %191 : vector<16x64xf32>
    %193 = arith.mulf %192, %179 : vector<16x64xf32>
    %cst_82 = arith.constant 0.000000e+00 : f32
    %194 = vector.broadcast %cst_82 : f32 to vector<16x64xf32>
    %195 = arith.subf %194, %174 : vector<16x64xf32>
    %196 = arith.mulf %195, %174 : vector<16x64xf32>
    %197 = math.exp %196 : vector<16x64xf32>
    %198 = arith.mulf %193, %197 : vector<16x64xf32>
    %cst_83 = arith.constant 1.000000e+00 : f32
    %199 = vector.broadcast %cst_83 : f32 to vector<16x64xf32>
    %200 = arith.subf %199, %198 : vector<16x64xf32>
    %201 = arith.mulf %173, %200 : vector<16x64xf32>
    %cst_84 = arith.constant 1.000000e+00 : f32
    %202 = vector.broadcast %cst_84 : f32 to vector<16x64xf32>
    %203 = arith.addf %202, %201 : vector<16x64xf32>
    %204 = arith.mulf %166, %203 : vector<16x64xf32>
    %205 = arith.truncf %204 : vector<16x64xf32> to vector<16x64xbf16>
    %c0_85 = arith.constant 0 : index
    %c0_86 = arith.constant 0 : index
    %c0_87 = arith.constant 0 : index
    %206 = vector.load %arg13[%c0_85, %c0_86, %c0_87] : memref<2x64x32xbf16, #tpu.memory_space<vmem>>, vector<1x64x32xbf16>
    %207 = vector.shape_cast %206 : vector<1x64x32xbf16> to vector<64x32xbf16>
    %cst_88 = arith.constant dense<0.000000e+00> : vector<16x32xf32>
    %208 = tpu.matmul %205, %207, %cst_88 {dimension_numbers = #tpu.dot_dimension_numbers<[1], [0], [0], [1], [0, 0, 1, 1], [], []>} : vector<16x64xbf16>, vector<64x32xbf16>, vector<16x32xf32> -> vector<16x32xf32>
    %c0_89 = arith.constant 0 : index
    %c0_90 = arith.constant 0 : index
    %c0_91 = arith.constant 0 : index
    %209 = vector.load %arg14[%c0_89, %c0_90, %c0_91] : memref<2x1x32xf32, #tpu.memory_space<vmem>>, vector<1x1x32xf32>
    %210 = vector.shape_cast %209 : vector<1x1x32xf32> to vector<1x32xf32>
    %211 = vector.broadcast %210 : vector<1x32xf32> to vector<16x32xf32>
    %212 = arith.addf %208, %211 : vector<16x32xf32>
    %213 = arith.addf %132, %212 : vector<16x32xf32>
    %c1 = arith.constant 1 : index
    %c0_92 = arith.constant 0 : index
    %c0_93 = arith.constant 0 : index
    %214 = vector.load %arg3[%c1, %c0_92, %c0_93] : memref<2x1x32xf32, #tpu.memory_space<vmem>>, vector<1x1x32xf32>
    %215 = vector.shape_cast %214 : vector<1x1x32xf32> to vector<1x32xf32>
    %c1_94 = arith.constant 1 : index
    %c0_95 = arith.constant 0 : index
    %c0_96 = arith.constant 0 : index
    %216 = vector.load %arg4[%c1_94, %c0_95, %c0_96] : memref<2x1x32xf32, #tpu.memory_space<vmem>>, vector<1x1x32xf32>
    %217 = vector.shape_cast %216 : vector<1x1x32xf32> to vector<1x32xf32>
    %cst_97 = arith.constant dense<0.000000e+00> : vector<16xf32>
    %218 = vector.multi_reduction <add>, %213, %cst_97 [1] : vector<16x32xf32> to vector<16xf32>
    %219 = vector.shape_cast %218 : vector<16xf32> to vector<16x1xf32>
    %cst_98 = arith.constant 3.200000e+01 : f32
    %220 = vector.broadcast %cst_98 : f32 to vector<16x1xf32>
    %221 = arith.divf %219, %220 : vector<16x1xf32>
    %222 = vector.broadcast %221 : vector<16x1xf32> to vector<16x32xf32>
    %223 = arith.subf %213, %222 : vector<16x32xf32>
    %224 = arith.mulf %223, %223 : vector<16x32xf32>
    %cst_99 = arith.constant dense<0.000000e+00> : vector<16xf32>
    %225 = vector.multi_reduction <add>, %224, %cst_99 [1] : vector<16x32xf32> to vector<16xf32>
    %226 = vector.shape_cast %225 : vector<16xf32> to vector<16x1xf32>
    %cst_100 = arith.constant 3.200000e+01 : f32
    %227 = vector.broadcast %cst_100 : f32 to vector<16x1xf32>
    %228 = arith.divf %226, %227 : vector<16x1xf32>
    %cst_101 = arith.constant 9.99999974E-6 : f32
    %229 = vector.broadcast %cst_101 : f32 to vector<16x1xf32>
    %230 = arith.addf %228, %229 : vector<16x1xf32>
    %231 = math.rsqrt %230 : vector<16x1xf32>
    %232 = vector.broadcast %231 : vector<16x1xf32> to vector<16x32xf32>
    %233 = arith.mulf %223, %232 : vector<16x32xf32>
    %234 = vector.broadcast %215 : vector<1x32xf32> to vector<16x32xf32>
    %235 = arith.mulf %233, %234 : vector<16x32xf32>
    %236 = vector.broadcast %217 : vector<1x32xf32> to vector<16x32xf32>
    %237 = arith.addf %235, %236 : vector<16x32xf32>
    %238 = arith.truncf %237 : vector<16x32xf32> to vector<16x32xbf16>
    %c1_102 = arith.constant 1 : index
    %c0_103 = arith.constant 0 : index
    %c0_104 = arith.constant 0 : index
    %239 = vector.load %arg5[%c1_102, %c0_103, %c0_104] : memref<2x32x96xbf16, #tpu.memory_space<vmem>>, vector<1x32x96xbf16>
    %240 = vector.shape_cast %239 : vector<1x32x96xbf16> to vector<32x96xbf16>
    %cst_105 = arith.constant dense<0.000000e+00> : vector<16x96xf32>
    %241 = tpu.matmul %238, %240, %cst_105 {dimension_numbers = #tpu.dot_dimension_numbers<[1], [0], [0], [1], [0, 0, 1, 1], [], []>} : vector<16x32xbf16>, vector<32x96xbf16>, vector<16x96xf32> -> vector<16x96xf32>
    %c1_106 = arith.constant 1 : index
    %c0_107 = arith.constant 0 : index
    %c0_108 = arith.constant 0 : index
    %242 = vector.load %arg6[%c1_106, %c0_107, %c0_108] : memref<2x1x96xf32, #tpu.memory_space<vmem>>, vector<1x1x96xf32>
    %243 = vector.shape_cast %242 : vector<1x1x96xf32> to vector<1x96xf32>
    %244 = vector.broadcast %243 : vector<1x96xf32> to vector<16x96xf32>
    %245 = arith.addf %241, %244 : vector<16x96xf32>
    %246 = vector.extract_strided_slice %245 {offsets = [0, 0], sizes = [16, 32], strides = [1, 1]} : vector<16x96xf32> to vector<16x32xf32>
    %247 = arith.truncf %246 : vector<16x32xf32> to vector<16x32xbf16>
    %248 = vector.extract_strided_slice %245 {offsets = [0, 32], sizes = [16, 32], strides = [1, 1]} : vector<16x96xf32> to vector<16x32xf32>
    %249 = arith.truncf %248 : vector<16x32xf32> to vector<16x32xbf16>
    %250 = vector.extract_strided_slice %245 {offsets = [0, 64], sizes = [16, 32], strides = [1, 1]} : vector<16x96xf32> to vector<16x32xf32>
    %251 = arith.truncf %250 : vector<16x32xf32> to vector<16x32xbf16>
    %c1_109 = arith.constant 1 : index
    %c0_110 = arith.constant 0 : index
    %c0_111 = arith.constant 0 : index
    %252 = vector.load %arg7[%c1_109, %c0_110, %c0_111] : memref<2x32x32xbf16, #tpu.memory_space<vmem>>, vector<1x32x32xbf16>
    %253 = vector.shape_cast %252 : vector<1x32x32xbf16> to vector<32x32xbf16>
    %254 = vector.extract_strided_slice %247 {offsets = [0, 0], sizes = [16, 8], strides = [1, 1]} : vector<16x32xbf16> to vector<16x8xbf16>
    %255 = vector.extract_strided_slice %249 {offsets = [0, 0], sizes = [16, 8], strides = [1, 1]} : vector<16x32xbf16> to vector<16x8xbf16>
    %cst_112 = arith.constant dense<0.000000e+00> : vector<16x16xf32>
    %256 = tpu.matmul %254, %255, %cst_112 {dimension_numbers = #tpu.dot_dimension_numbers<[1], [1], [0], [0], [0, 0, 1, 0], [], []>} : vector<16x8xbf16>, vector<16x8xbf16>, vector<16x16xf32> -> vector<16x16xf32>
    %c0_113 = arith.constant 0 : index
    %c0_114 = arith.constant 0 : index
    %257 = vector.load %arg2[%c0_113, %c0_114] : memref<16x16xf32, #tpu.memory_space<vmem>>, vector<16x16xf32>
    %258 = arith.addf %256, %257 : vector<16x16xf32>
    %cst_115 = arith.constant dense<0xFF800000> : vector<16xf32>
    %259 = vector.multi_reduction <maximumf>, %258, %cst_115 [1] : vector<16x16xf32> to vector<16xf32>
    %260 = vector.shape_cast %259 : vector<16xf32> to vector<16x1xf32>
    %261 = vector.broadcast %260 : vector<16x1xf32> to vector<16x16xf32>
    %262 = arith.subf %258, %261 : vector<16x16xf32>
    %263 = math.exp %262 : vector<16x16xf32>
    %cst_116 = arith.constant dense<0.000000e+00> : vector<16xf32>
    %264 = vector.multi_reduction <add>, %263, %cst_116 [1] : vector<16x16xf32> to vector<16xf32>
    %265 = vector.shape_cast %264 : vector<16xf32> to vector<16x1xf32>
    %266 = tpu.reciprocal %265 {approx = true} : vector<16x1xf32> -> vector<16x1xf32>
    %267 = vector.broadcast %266 : vector<16x1xf32> to vector<16x16xf32>
    %268 = arith.mulf %263, %267 : vector<16x16xf32>
    %269 = arith.truncf %268 : vector<16x16xf32> to vector<16x16xbf16>
    %270 = vector.extract_strided_slice %251 {offsets = [0, 0], sizes = [16, 8], strides = [1, 1]} : vector<16x32xbf16> to vector<16x8xbf16>
    %cst_117 = arith.constant dense<0.000000e+00> : vector<16x8xf32>
    %271 = tpu.matmul %269, %270, %cst_117 {dimension_numbers = #tpu.dot_dimension_numbers<[1], [0], [0], [1], [0, 0, 1, 1], [], []>} : vector<16x16xbf16>, vector<16x8xbf16>, vector<16x8xf32> -> vector<16x8xf32>
    %272 = arith.truncf %271 : vector<16x8xf32> to vector<16x8xbf16>
    %273 = vector.extract_strided_slice %253 {offsets = [0, 0], sizes = [8, 32], strides = [1, 1]} : vector<32x32xbf16> to vector<8x32xbf16>
    %cst_118 = arith.constant dense<0.000000e+00> : vector<16x32xf32>
    %274 = tpu.matmul %272, %273, %cst_118 {dimension_numbers = #tpu.dot_dimension_numbers<[1], [0], [0], [1], [0, 0, 1, 1], [], []>} : vector<16x8xbf16>, vector<8x32xbf16>, vector<16x32xf32> -> vector<16x32xf32>
    %275 = vector.extract_strided_slice %247 {offsets = [0, 8], sizes = [16, 8], strides = [1, 1]} : vector<16x32xbf16> to vector<16x8xbf16>
    %276 = vector.extract_strided_slice %249 {offsets = [0, 8], sizes = [16, 8], strides = [1, 1]} : vector<16x32xbf16> to vector<16x8xbf16>
    %cst_119 = arith.constant dense<0.000000e+00> : vector<16x16xf32>
    %277 = tpu.matmul %275, %276, %cst_119 {dimension_numbers = #tpu.dot_dimension_numbers<[1], [1], [0], [0], [0, 0, 1, 0], [], []>} : vector<16x8xbf16>, vector<16x8xbf16>, vector<16x16xf32> -> vector<16x16xf32>
    %c0_120 = arith.constant 0 : index
    %c0_121 = arith.constant 0 : index
    %278 = vector.load %arg2[%c0_120, %c0_121] : memref<16x16xf32, #tpu.memory_space<vmem>>, vector<16x16xf32>
    %279 = arith.addf %277, %278 : vector<16x16xf32>
    %cst_122 = arith.constant dense<0xFF800000> : vector<16xf32>
    %280 = vector.multi_reduction <maximumf>, %279, %cst_122 [1] : vector<16x16xf32> to vector<16xf32>
    %281 = vector.shape_cast %280 : vector<16xf32> to vector<16x1xf32>
    %282 = vector.broadcast %281 : vector<16x1xf32> to vector<16x16xf32>
    %283 = arith.subf %279, %282 : vector<16x16xf32>
    %284 = math.exp %283 : vector<16x16xf32>
    %cst_123 = arith.constant dense<0.000000e+00> : vector<16xf32>
    %285 = vector.multi_reduction <add>, %284, %cst_123 [1] : vector<16x16xf32> to vector<16xf32>
    %286 = vector.shape_cast %285 : vector<16xf32> to vector<16x1xf32>
    %287 = tpu.reciprocal %286 {approx = true} : vector<16x1xf32> -> vector<16x1xf32>
    %288 = vector.broadcast %287 : vector<16x1xf32> to vector<16x16xf32>
    %289 = arith.mulf %284, %288 : vector<16x16xf32>
    %290 = arith.truncf %289 : vector<16x16xf32> to vector<16x16xbf16>
    %291 = vector.extract_strided_slice %251 {offsets = [0, 8], sizes = [16, 8], strides = [1, 1]} : vector<16x32xbf16> to vector<16x8xbf16>
    %cst_124 = arith.constant dense<0.000000e+00> : vector<16x8xf32>
    %292 = tpu.matmul %290, %291, %cst_124 {dimension_numbers = #tpu.dot_dimension_numbers<[1], [0], [0], [1], [0, 0, 1, 1], [], []>} : vector<16x16xbf16>, vector<16x8xbf16>, vector<16x8xf32> -> vector<16x8xf32>
    %293 = arith.truncf %292 : vector<16x8xf32> to vector<16x8xbf16>
    %294 = vector.extract_strided_slice %253 {offsets = [8, 0], sizes = [8, 32], strides = [1, 1]} : vector<32x32xbf16> to vector<8x32xbf16>
    %cst_125 = arith.constant dense<0.000000e+00> : vector<16x32xf32>
    %295 = tpu.matmul %293, %294, %cst_125 {dimension_numbers = #tpu.dot_dimension_numbers<[1], [0], [0], [1], [0, 0, 1, 1], [], []>} : vector<16x8xbf16>, vector<8x32xbf16>, vector<16x32xf32> -> vector<16x32xf32>
    %296 = arith.addf %274, %295 : vector<16x32xf32>
    %297 = vector.extract_strided_slice %247 {offsets = [0, 16], sizes = [16, 8], strides = [1, 1]} : vector<16x32xbf16> to vector<16x8xbf16>
    %298 = vector.extract_strided_slice %249 {offsets = [0, 16], sizes = [16, 8], strides = [1, 1]} : vector<16x32xbf16> to vector<16x8xbf16>
    %cst_126 = arith.constant dense<0.000000e+00> : vector<16x16xf32>
    %299 = tpu.matmul %297, %298, %cst_126 {dimension_numbers = #tpu.dot_dimension_numbers<[1], [1], [0], [0], [0, 0, 1, 0], [], []>} : vector<16x8xbf16>, vector<16x8xbf16>, vector<16x16xf32> -> vector<16x16xf32>
    %c0_127 = arith.constant 0 : index
    %c0_128 = arith.constant 0 : index
    %300 = vector.load %arg2[%c0_127, %c0_128] : memref<16x16xf32, #tpu.memory_space<vmem>>, vector<16x16xf32>
    %301 = arith.addf %299, %300 : vector<16x16xf32>
    %cst_129 = arith.constant dense<0xFF800000> : vector<16xf32>
    %302 = vector.multi_reduction <maximumf>, %301, %cst_129 [1] : vector<16x16xf32> to vector<16xf32>
    %303 = vector.shape_cast %302 : vector<16xf32> to vector<16x1xf32>
    %304 = vector.broadcast %303 : vector<16x1xf32> to vector<16x16xf32>
    %305 = arith.subf %301, %304 : vector<16x16xf32>
    %306 = math.exp %305 : vector<16x16xf32>
    %cst_130 = arith.constant dense<0.000000e+00> : vector<16xf32>
    %307 = vector.multi_reduction <add>, %306, %cst_130 [1] : vector<16x16xf32> to vector<16xf32>
    %308 = vector.shape_cast %307 : vector<16xf32> to vector<16x1xf32>
    %309 = tpu.reciprocal %308 {approx = true} : vector<16x1xf32> -> vector<16x1xf32>
    %310 = vector.broadcast %309 : vector<16x1xf32> to vector<16x16xf32>
    %311 = arith.mulf %306, %310 : vector<16x16xf32>
    %312 = arith.truncf %311 : vector<16x16xf32> to vector<16x16xbf16>
    %313 = vector.extract_strided_slice %251 {offsets = [0, 16], sizes = [16, 8], strides = [1, 1]} : vector<16x32xbf16> to vector<16x8xbf16>
    %cst_131 = arith.constant dense<0.000000e+00> : vector<16x8xf32>
    %314 = tpu.matmul %312, %313, %cst_131 {dimension_numbers = #tpu.dot_dimension_numbers<[1], [0], [0], [1], [0, 0, 1, 1], [], []>} : vector<16x16xbf16>, vector<16x8xbf16>, vector<16x8xf32> -> vector<16x8xf32>
    %315 = arith.truncf %314 : vector<16x8xf32> to vector<16x8xbf16>
    %316 = vector.extract_strided_slice %253 {offsets = [16, 0], sizes = [8, 32], strides = [1, 1]} : vector<32x32xbf16> to vector<8x32xbf16>
    %cst_132 = arith.constant dense<0.000000e+00> : vector<16x32xf32>
    %317 = tpu.matmul %315, %316, %cst_132 {dimension_numbers = #tpu.dot_dimension_numbers<[1], [0], [0], [1], [0, 0, 1, 1], [], []>} : vector<16x8xbf16>, vector<8x32xbf16>, vector<16x32xf32> -> vector<16x32xf32>
    %318 = arith.addf %296, %317 : vector<16x32xf32>
    %319 = vector.extract_strided_slice %247 {offsets = [0, 24], sizes = [16, 8], strides = [1, 1]} : vector<16x32xbf16> to vector<16x8xbf16>
    %320 = vector.extract_strided_slice %249 {offsets = [0, 24], sizes = [16, 8], strides = [1, 1]} : vector<16x32xbf16> to vector<16x8xbf16>
    %cst_133 = arith.constant dense<0.000000e+00> : vector<16x16xf32>
    %321 = tpu.matmul %319, %320, %cst_133 {dimension_numbers = #tpu.dot_dimension_numbers<[1], [1], [0], [0], [0, 0, 1, 0], [], []>} : vector<16x8xbf16>, vector<16x8xbf16>, vector<16x16xf32> -> vector<16x16xf32>
    %c0_134 = arith.constant 0 : index
    %c0_135 = arith.constant 0 : index
    %322 = vector.load %arg2[%c0_134, %c0_135] : memref<16x16xf32, #tpu.memory_space<vmem>>, vector<16x16xf32>
    %323 = arith.addf %321, %322 : vector<16x16xf32>
    %cst_136 = arith.constant dense<0xFF800000> : vector<16xf32>
    %324 = vector.multi_reduction <maximumf>, %323, %cst_136 [1] : vector<16x16xf32> to vector<16xf32>
    %325 = vector.shape_cast %324 : vector<16xf32> to vector<16x1xf32>
    %326 = vector.broadcast %325 : vector<16x1xf32> to vector<16x16xf32>
    %327 = arith.subf %323, %326 : vector<16x16xf32>
    %328 = math.exp %327 : vector<16x16xf32>
    %cst_137 = arith.constant dense<0.000000e+00> : vector<16xf32>
    %329 = vector.multi_reduction <add>, %328, %cst_137 [1] : vector<16x16xf32> to vector<16xf32>
    %330 = vector.shape_cast %329 : vector<16xf32> to vector<16x1xf32>
    %331 = tpu.reciprocal %330 {approx = true} : vector<16x1xf32> -> vector<16x1xf32>
    %332 = vector.broadcast %331 : vector<16x1xf32> to vector<16x16xf32>
    %333 = arith.mulf %328, %332 : vector<16x16xf32>
    %334 = arith.truncf %333 : vector<16x16xf32> to vector<16x16xbf16>
    %335 = vector.extract_strided_slice %251 {offsets = [0, 24], sizes = [16, 8], strides = [1, 1]} : vector<16x32xbf16> to vector<16x8xbf16>
    %cst_138 = arith.constant dense<0.000000e+00> : vector<16x8xf32>
    %336 = tpu.matmul %334, %335, %cst_138 {dimension_numbers = #tpu.dot_dimension_numbers<[1], [0], [0], [1], [0, 0, 1, 1], [], []>} : vector<16x16xbf16>, vector<16x8xbf16>, vector<16x8xf32> -> vector<16x8xf32>
    %337 = arith.truncf %336 : vector<16x8xf32> to vector<16x8xbf16>
    %338 = vector.extract_strided_slice %253 {offsets = [24, 0], sizes = [8, 32], strides = [1, 1]} : vector<32x32xbf16> to vector<8x32xbf16>
    %cst_139 = arith.constant dense<0.000000e+00> : vector<16x32xf32>
    %339 = tpu.matmul %337, %338, %cst_139 {dimension_numbers = #tpu.dot_dimension_numbers<[1], [0], [0], [1], [0, 0, 1, 1], [], []>} : vector<16x8xbf16>, vector<8x32xbf16>, vector<16x32xf32> -> vector<16x32xf32>
    %340 = arith.addf %318, %339 : vector<16x32xf32>
    %341 = arith.addf %213, %340 : vector<16x32xf32>
    %c1_140 = arith.constant 1 : index
    %c0_141 = arith.constant 0 : index
    %c0_142 = arith.constant 0 : index
    %342 = vector.load %arg8[%c1_140, %c0_141, %c0_142] : memref<2x1x32xf32, #tpu.memory_space<vmem>>, vector<1x1x32xf32>
    %343 = vector.shape_cast %342 : vector<1x1x32xf32> to vector<1x32xf32>
    %344 = vector.broadcast %343 : vector<1x32xf32> to vector<16x32xf32>
    %345 = arith.addf %341, %344 : vector<16x32xf32>
    %c1_143 = arith.constant 1 : index
    %c0_144 = arith.constant 0 : index
    %c0_145 = arith.constant 0 : index
    %346 = vector.load %arg9[%c1_143, %c0_144, %c0_145] : memref<2x1x32xf32, #tpu.memory_space<vmem>>, vector<1x1x32xf32>
    %347 = vector.shape_cast %346 : vector<1x1x32xf32> to vector<1x32xf32>
    %c1_146 = arith.constant 1 : index
    %c0_147 = arith.constant 0 : index
    %c0_148 = arith.constant 0 : index
    %348 = vector.load %arg10[%c1_146, %c0_147, %c0_148] : memref<2x1x32xf32, #tpu.memory_space<vmem>>, vector<1x1x32xf32>
    %349 = vector.shape_cast %348 : vector<1x1x32xf32> to vector<1x32xf32>
    %cst_149 = arith.constant dense<0.000000e+00> : vector<16xf32>
    %350 = vector.multi_reduction <add>, %345, %cst_149 [1] : vector<16x32xf32> to vector<16xf32>
    %351 = vector.shape_cast %350 : vector<16xf32> to vector<16x1xf32>
    %cst_150 = arith.constant 3.200000e+01 : f32
    %352 = vector.broadcast %cst_150 : f32 to vector<16x1xf32>
    %353 = arith.divf %351, %352 : vector<16x1xf32>
    %354 = vector.broadcast %353 : vector<16x1xf32> to vector<16x32xf32>
    %355 = arith.subf %345, %354 : vector<16x32xf32>
    %356 = arith.mulf %355, %355 : vector<16x32xf32>
    %cst_151 = arith.constant dense<0.000000e+00> : vector<16xf32>
    %357 = vector.multi_reduction <add>, %356, %cst_151 [1] : vector<16x32xf32> to vector<16xf32>
    %358 = vector.shape_cast %357 : vector<16xf32> to vector<16x1xf32>
    %cst_152 = arith.constant 3.200000e+01 : f32
    %359 = vector.broadcast %cst_152 : f32 to vector<16x1xf32>
    %360 = arith.divf %358, %359 : vector<16x1xf32>
    %cst_153 = arith.constant 9.99999974E-6 : f32
    %361 = vector.broadcast %cst_153 : f32 to vector<16x1xf32>
    %362 = arith.addf %360, %361 : vector<16x1xf32>
    %363 = math.rsqrt %362 : vector<16x1xf32>
    %364 = vector.broadcast %363 : vector<16x1xf32> to vector<16x32xf32>
    %365 = arith.mulf %355, %364 : vector<16x32xf32>
    %366 = vector.broadcast %347 : vector<1x32xf32> to vector<16x32xf32>
    %367 = arith.mulf %365, %366 : vector<16x32xf32>
    %368 = vector.broadcast %349 : vector<1x32xf32> to vector<16x32xf32>
    %369 = arith.addf %367, %368 : vector<16x32xf32>
    %370 = arith.truncf %369 : vector<16x32xf32> to vector<16x32xbf16>
    %c1_154 = arith.constant 1 : index
    %c0_155 = arith.constant 0 : index
    %c0_156 = arith.constant 0 : index
    %371 = vector.load %arg11[%c1_154, %c0_155, %c0_156] : memref<2x32x64xbf16, #tpu.memory_space<vmem>>, vector<1x32x64xbf16>
    %372 = vector.shape_cast %371 : vector<1x32x64xbf16> to vector<32x64xbf16>
    %cst_157 = arith.constant dense<0.000000e+00> : vector<16x64xf32>
    %373 = tpu.matmul %370, %372, %cst_157 {dimension_numbers = #tpu.dot_dimension_numbers<[1], [0], [0], [1], [0, 0, 1, 1], [], []>} : vector<16x32xbf16>, vector<32x64xbf16>, vector<16x64xf32> -> vector<16x64xf32>
    %c1_158 = arith.constant 1 : index
    %c0_159 = arith.constant 0 : index
    %c0_160 = arith.constant 0 : index
    %374 = vector.load %arg12[%c1_158, %c0_159, %c0_160] : memref<2x1x64xf32, #tpu.memory_space<vmem>>, vector<1x1x64xf32>
    %375 = vector.shape_cast %374 : vector<1x1x64xf32> to vector<1x64xf32>
    %376 = vector.broadcast %375 : vector<1x64xf32> to vector<16x64xf32>
    %377 = arith.addf %373, %376 : vector<16x64xf32>
    %cst_161 = arith.constant 5.000000e-01 : f32
    %378 = vector.broadcast %cst_161 : f32 to vector<16x64xf32>
    %379 = arith.mulf %378, %377 : vector<16x64xf32>
    %cst_162 = arith.constant 0.707106769 : f32
    %380 = vector.broadcast %cst_162 : f32 to vector<16x64xf32>
    %381 = arith.mulf %377, %380 : vector<16x64xf32>
    %cst_163 = arith.constant 0.000000e+00 : f32
    %382 = vector.broadcast %cst_163 : f32 to vector<16x64xf32>
    %383 = arith.cmpf olt, %381, %382 : vector<16x64xf32>
    %cst_164 = arith.constant -1.000000e+00 : f32
    %cst_165 = arith.constant 1.000000e+00 : f32
    %384 = vector.broadcast %cst_164 : f32 to vector<16x64xf32>
    %385 = vector.broadcast %cst_165 : f32 to vector<16x64xf32>
    %386 = arith.select %383, %384, %385 : vector<16x64xi1>, vector<16x64xf32>
    %387 = math.absf %381 : vector<16x64xf32>
    %cst_166 = arith.constant 0.327591091 : f32
    %388 = vector.broadcast %cst_166 : f32 to vector<16x64xf32>
    %389 = arith.mulf %388, %387 : vector<16x64xf32>
    %cst_167 = arith.constant 1.000000e+00 : f32
    %390 = vector.broadcast %cst_167 : f32 to vector<16x64xf32>
    %391 = arith.addf %390, %389 : vector<16x64xf32>
    %392 = tpu.reciprocal %391 {approx = true} : vector<16x64xf32> -> vector<16x64xf32>
    %cst_168 = arith.constant 1.06140542 : f32
    %393 = vector.broadcast %cst_168 : f32 to vector<16x64xf32>
    %394 = arith.mulf %393, %392 : vector<16x64xf32>
    %cst_169 = arith.constant -1.45315206 : f32
    %395 = vector.broadcast %cst_169 : f32 to vector<16x64xf32>
    %396 = arith.addf %394, %395 : vector<16x64xf32>
    %397 = arith.mulf %396, %392 : vector<16x64xf32>
    %cst_170 = arith.constant 1.42141378 : f32
    %398 = vector.broadcast %cst_170 : f32 to vector<16x64xf32>
    %399 = arith.addf %397, %398 : vector<16x64xf32>
    %400 = arith.mulf %399, %392 : vector<16x64xf32>
    %cst_171 = arith.constant -0.284496725 : f32
    %401 = vector.broadcast %cst_171 : f32 to vector<16x64xf32>
    %402 = arith.addf %400, %401 : vector<16x64xf32>
    %403 = arith.mulf %402, %392 : vector<16x64xf32>
    %cst_172 = arith.constant 0.254829586 : f32
    %404 = vector.broadcast %cst_172 : f32 to vector<16x64xf32>
    %405 = arith.addf %403, %404 : vector<16x64xf32>
    %406 = arith.mulf %405, %392 : vector<16x64xf32>
    %cst_173 = arith.constant 0.000000e+00 : f32
    %407 = vector.broadcast %cst_173 : f32 to vector<16x64xf32>
    %408 = arith.subf %407, %387 : vector<16x64xf32>
    %409 = arith.mulf %408, %387 : vector<16x64xf32>
    %410 = math.exp %409 : vector<16x64xf32>
    %411 = arith.mulf %406, %410 : vector<16x64xf32>
    %cst_174 = arith.constant 1.000000e+00 : f32
    %412 = vector.broadcast %cst_174 : f32 to vector<16x64xf32>
    %413 = arith.subf %412, %411 : vector<16x64xf32>
    %414 = arith.mulf %386, %413 : vector<16x64xf32>
    %cst_175 = arith.constant 1.000000e+00 : f32
    %415 = vector.broadcast %cst_175 : f32 to vector<16x64xf32>
    %416 = arith.addf %415, %414 : vector<16x64xf32>
    %417 = arith.mulf %379, %416 : vector<16x64xf32>
    %418 = arith.truncf %417 : vector<16x64xf32> to vector<16x64xbf16>
    %c1_176 = arith.constant 1 : index
    %c0_177 = arith.constant 0 : index
    %c0_178 = arith.constant 0 : index
    %419 = vector.load %arg13[%c1_176, %c0_177, %c0_178] : memref<2x64x32xbf16, #tpu.memory_space<vmem>>, vector<1x64x32xbf16>
    %420 = vector.shape_cast %419 : vector<1x64x32xbf16> to vector<64x32xbf16>
    %cst_179 = arith.constant dense<0.000000e+00> : vector<16x32xf32>
    %421 = tpu.matmul %418, %420, %cst_179 {dimension_numbers = #tpu.dot_dimension_numbers<[1], [0], [0], [1], [0, 0, 1, 1], [], []>} : vector<16x64xbf16>, vector<64x32xbf16>, vector<16x32xf32> -> vector<16x32xf32>
    %c1_180 = arith.constant 1 : index
    %c0_181 = arith.constant 0 : index
    %c0_182 = arith.constant 0 : index
    %422 = vector.load %arg14[%c1_180, %c0_181, %c0_182] : memref<2x1x32xf32, #tpu.memory_space<vmem>>, vector<1x1x32xf32>
    %423 = vector.shape_cast %422 : vector<1x1x32xf32> to vector<1x32xf32>
    %424 = vector.broadcast %423 : vector<1x32xf32> to vector<16x32xf32>
    %425 = arith.addf %421, %424 : vector<16x32xf32>
    %426 = arith.addf %345, %425 : vector<16x32xf32>
    %c0_183 = arith.constant 0 : index
    %c0_184 = arith.constant 0 : index
    %427 = vector.load %arg15[%c0_183, %c0_184] : memref<16x32xf32, #tpu.memory_space<vmem>>, vector<16x32xf32>
    tpu.vector_store %arg15[%c0_183, %c0_184], %426 {strides = array<i32>} : memref<16x32xf32, #tpu.memory_space<vmem>>, vector<16x32xf32>,
    return
  }
  func.func @transform_0(%arg0: i32) -> (i32, i32) {
    %c0_i32 = arith.constant 0 : i32
    %c0_i32_0 = arith.constant 0 : i32
    return %arg0, %c0_i32 : i32, i32
  }
  func.func @transform_1(%arg0: i32) -> (i32, i32) {
    %c0_i32 = arith.constant 0 : i32
    %c0_i32_0 = arith.constant 0 : i32
    %c0_i32_1 = arith.constant 0 : i32
    return %c0_i32, %c0_i32_0 : i32, i32
  }
  func.func @transform_2(%arg0: i32) -> (i32, i32, i32) {
    %c0_i32 = arith.constant 0 : i32
    %c0_i32_0 = arith.constant 0 : i32
    %c0_i32_1 = arith.constant 0 : i32
    %c0_i32_2 = arith.constant 0 : i32
    return %c0_i32, %c0_i32_0, %c0_i32_1 : i32, i32, i32
  }
  func.func @transform_3(%arg0: i32) -> (i32, i32, i32) {
    %c0_i32 = arith.constant 0 : i32
    %c0_i32_0 = arith.constant 0 : i32
    %c0_i32_1 = arith.constant 0 : i32
    %c0_i32_2 = arith.constant 0 : i32
    return %c0_i32, %c0_i32_0, %c0_i32_1 : i32, i32, i32
  }
  func.func @transform_4(%arg0: i32) -> (i32, i32, i32) {
    %c0_i32 = arith.constant 0 : i32
    %c0_i32_0 = arith.constant 0 : i32
    %c0_i32_1 = arith.constant 0 : i32
    %c0_i32_2 = arith.constant 0 : i32
    return %c0_i32, %c0_i32_0, %c0_i32_1 : i32, i32, i32
  }
  func.func @transform_5(%arg0: i32) -> (i32, i32, i32) {
    %c0_i32 = arith.constant 0 : i32
    %c0_i32_0 = arith.constant 0 : i32
    %c0_i32_1 = arith.constant 0 : i32
    %c0_i32_2 = arith.constant 0 : i32
    return %c0_i32, %c0_i32_0, %c0_i32_1 : i32, i32, i32
  }
  func.func @transform_6(%arg0: i32) -> (i32, i32, i32) {
    %c0_i32 = arith.constant 0 : i32
    %c0_i32_0 = arith.constant 0 : i32
    %c0_i32_1 = arith.constant 0 : i32
    %c0_i32_2 = arith.constant 0 : i32
    return %c0_i32, %c0_i32_0, %c0_i32_1 : i32, i32, i32
  }
  func.func @transform_7(%arg0: i32) -> (i32, i32, i32) {
    %c0_i32 = arith.constant 0 : i32
    %c0_i32_0 = arith.constant 0 : i32
    %c0_i32_1 = arith.constant 0 : i32
    %c0_i32_2 = arith.constant 0 : i32
    return %c0_i32, %c0_i32_0, %c0_i32_1 : i32, i32, i32
  }
  func.func @transform_8(%arg0: i32) -> (i32, i32, i32) {
    %c0_i32 = arith.constant 0 : i32
    %c0_i32_0 = arith.constant 0 : i32
    %c0_i32_1 = arith.constant 0 : i32
    %c0_i32_2 = arith.constant 0 : i32
    return %c0_i32, %c0_i32_0, %c0_i32_1 : i32, i32, i32
  }
  func.func @transform_9(%arg0: i32) -> (i32, i32, i32) {
    %c0_i32 = arith.constant 0 : i32
    %c0_i32_0 = arith.constant 0 : i32
    %c0_i32_1 = arith.constant 0 : i32
    %c0_i32_2 = arith.constant 0 : i32
    return %c0_i32, %c0_i32_0, %c0_i32_1 : i32, i32, i32
  }
  func.func @transform_10(%arg0: i32) -> (i32, i32, i32) {
    %c0_i32 = arith.constant 0 : i32
    %c0_i32_0 = arith.constant 0 : i32
    %c0_i32_1 = arith.constant 0 : i32
    %c0_i32_2 = arith.constant 0 : i32
    return %c0_i32, %c0_i32_0, %c0_i32_1 : i32, i32, i32
  }
  func.func @transform_11(%arg0: i32) -> (i32, i32, i32) {
    %c0_i32 = arith.constant 0 : i32
    %c0_i32_0 = arith.constant 0 : i32
    %c0_i32_1 = arith.constant 0 : i32
    %c0_i32_2 = arith.constant 0 : i32
    return %c0_i32, %c0_i32_0, %c0_i32_1 : i32, i32, i32
  }
  func.func @transform_12(%arg0: i32) -> (i32, i32, i32) {
    %c0_i32 = arith.constant 0 : i32
    %c0_i32_0 = arith.constant 0 : i32
    %c0_i32_1 = arith.constant 0 : i32
    %c0_i32_2 = arith.constant 0 : i32
    return %c0_i32, %c0_i32_0, %c0_i32_1 : i32, i32, i32
  }
  func.func @transform_13(%arg0: i32) -> (i32, i32, i32) {
    %c0_i32 = arith.constant 0 : i32
    %c0_i32_0 = arith.constant 0 : i32
    %c0_i32_1 = arith.constant 0 : i32
    %c0_i32_2 = arith.constant 0 : i32
    return %c0_i32, %c0_i32_0, %c0_i32_1 : i32, i32, i32
  }
  func.func @transform_14(%arg0: i32) -> (i32, i32) {
    %c0_i32 = arith.constant 0 : i32
    %c0_i32_0 = arith.constant 0 : i32
    return %arg0, %c0_i32 : i32, i32
  }
}

</mosaic_0001>

<bundles_post_ra>
// kernel: tpu_custom_call.1
= control target key start
LH: loop header
LB: loop body
LE: loop exit
PB: predicated region body
PF: predicated region fallthrough
CT: control target
= control target key end

     0   :  { %19 = vsyncpa [#allocation3], 0  ;;  %s3428_s0 = inlined_call_operand.hbm [shape: f32[16,32], index: 0, kind: input, shape index: {}]   ;;  %s3429_s1 = inlined_call_operand.hbm [shape: f32[16,16], index: 1, kind: input, shape index: {}]   ;;  %s3430_s2 = inlined_call_operand.vmem [shape: f32[2,1,32], index: 2, kind: input, shape index: {}]   ;;  %s3431_s3 = inlined_call_operand.vmem [shape: f32[2,1,32], index: 3, kind: input, shape index: {}]   ;;  %s3432_s4 = inlined_call_operand.vmem [shape: bf16[2,32,96], index: 4, kind: input, shape index: {}]   ;;  %s3433_s5 = inlined_call_operand.vmem [shape: f32[2,1,96], index: 5, kind: input, shape index: {}]   ;;  %s3434_s6 = inlined_call_operand.vmem [shape: bf16[2,32,32], index: 6, kind: input, shape index: {}]   ;;  %s3435_s7 = inlined_call_operand.vmem [shape: f32[2,1,32], index: 7, kind: input, shape index: {}]   ;;  %s3436_s8 = inlined_call_operand.vmem [shape: f32[2,1,32], index: 8, kind: input, shape index: {}]   ;;  %s3437_s9 = inlined_call_operand.vmem [shape: f32[2,1,32], index: 9, kind: input, shape index: {}]   ;;  %s3438_s10 = inlined_call_operand.vmem [shape: bf16[2,32,64], index: 10, kind: input, shape index: {}]   ;;  %s3439_s11 = inlined_call_operand.hbm [shape: f32[2,1,64], index: 11, kind: input, shape index: {}]   ;;  %s3440_s12 = inlined_call_operand.vmem [shape: bf16[2,64,32], index: 12, kind: input, shape index: {}]   ;;  %s3441_s13 = inlined_call_operand.vmem [shape: f32[2,1,32], index: 13, kind: input, shape index: {}]   ;;  %s3442_s14 = inlined_call_operand.hbm [shape: f32[16,32], index: 14, kind: output, shape index: {}]  }
   0x1   :  { %20 = vsyncpa [#allocation6], 0 }
   0x2   :  { %21 = vsyncpa [#allocation4], 0  ;;  %s2835_s29 = smov [#allocation5]   ;;  %s2836_s15 = smov [#allocation2]  }
   0x3   :  { %s39_s30 = sshll.u32 %s2835_s29, 4  ;;  %s27_s16 = sshll.u32 %s2836_s15, 4  ;;  %s40_s30 = int_to_ptr.vmem [resolvable:$true] %s39_s30  ;;  %s2932_s16 = int_to_ptr.vmem [resolvable:$true] %s27_s16 }
   0x4   :  { %s2741_s19 = scalar_lea.hbm %s3429_s1, 256 }
   0x5   :  { %p2742_p0 = scmp.ne.s32.totalorder %s3429_s1, %s2741_s19  ;;  %p2745_p1 = scmp.lt.u32.totalorder %s2741_s19, %s3429_s1 }
   0x7   :  { %p2747_p2 = pnand %p2745_p1, %p2742_p0 }
   0x9   :  { %2750 = shalt.err (!%p2747_p2)
}
   0xa   :  { %s2751_s24 = scalar_lea.vmem %s40_s30, 256  ;;  %p2756_p4 = scmp.lt.s32.totalorder %s40_s30, %s40_s30 }
   0xb   :  { %p2752_p3 = scmp.ne.s32.totalorder %s40_s30, %s2751_s24  ;;  %p2757_p5 = scmp.lt.s32.totalorder %s2751_s24, %s2751_s24 }
   0xd   :  { %p2758_p6 = por %p2757_p5, %p2756_p4 }
   0xf   :  { %p2759_p7 = pnand %p2758_p6, %p2752_p3 }
  0x11   :  { %2762 = shalt.err (!%p2759_p7)
}
  0x12   :  { %s3443_s25 = smov 128   ;;  %s2838_s26 = smov 8  }
  0x13   :  { %45 = dma.hbm_to_vmem [thread:$0]  %s3429_s1, 256, %s40_s30, [#allocation6], %s3443_s25, %s3443_s25, %s2838_s26  }
  0x14   :  { %s2763_s17 = scalar_lea.hbm %s3428_s0, 256 }
  0x15   :  { %p2764_p8 = scmp.ne.s32.totalorder %s3428_s0, %s2763_s17  ;;  %p2767_p9 = scmp.lt.u32.totalorder %s2763_s17, %s3428_s0 }
  0x17   :  { %p2769_p10 = pnand %p2767_p9, %p2764_p8 }
  0x19   :  { %2772 = shalt.err (!%p2769_p10)
}
  0x1a   :  { %s2773_s22 = scalar_lea.vmem %s2932_s16, 256  ;;  %p2778_p12 = scmp.lt.s32.totalorder %s2932_s16, %s2932_s16 }
  0x1b   :  { %p2774_p11 = scmp.ne.s32.totalorder %s2932_s16, %s2773_s22  ;;  %p2779_p13 = scmp.lt.s32.totalorder %s2773_s22, %s2773_s22 }
  0x1d   :  { %p2780_p0 = por %p2779_p13, %p2778_p12 }
  0x1f   :  { %p2781_p1 = pnand %p2780_p0, %p2774_p11 }
  0x21   :  { %2784 = shalt.err (!%p2781_p1)
}
  0x22   :  { %33 = dma.hbm_to_vmem [thread:$0]  %s3428_s0, 256, %s2932_s16, [#allocation3], %s3443_s25, %s3443_s25, %s2838_s26  }
  0x23   :  { %s2839_s23 = smov [#allocation7]   ;;  %s2785_s29 = scalar_lea.hbm %s3439_s11, 32 }
  0x24   :  { %s69_s24 = sshll.u32 %s2839_s23, 4  ;;  %p2786_p2 = scmp.ne.s32.totalorder %s3439_s11, %s2785_s29  ;;  %s70_s24 = int_to_ptr.vmem [resolvable:$true] %s69_s24 }
  0x25   :  { %p2789_p3 = scmp.lt.u32.totalorder %s2785_s29, %s3439_s11 }
  0x27   :  { %p2791_p4 = pnand %p2789_p3, %p2786_p2 }
  0x29   :  { %2794 = shalt.err (!%p2791_p4)
}
  0x2a   :  { %s2795_s20 = scalar_lea.vmem %s70_s24, 32  ;;  %p2800_p6 = scmp.lt.s32.totalorder %s70_s24, %s70_s24 }
  0x2b   :  { %p2796_p5 = scmp.ne.s32.totalorder %s70_s24, %s2795_s20  ;;  %p2801_p7 = scmp.lt.s32.totalorder %s2795_s20, %s2795_s20 }
  0x2d   :  { %p2802_p8 = por %p2801_p7, %p2800_p6 }
  0x2f   :  { %p2803_p9 = pnand %p2802_p8, %p2796_p5 }
  0x31   :  { %2806 = shalt.err (!%p2803_p9)
}
  0x32   :  { %s2840_s0 = smov 16   ;;  %s2841_s16 = smov 1  }
  0x33   :  { %75 = dma.hbm_to_vmem [thread:$0]  %s3439_s11, 32, %s70_s24, [#allocation6], %s2840_s0, %s2840_s0, %s2841_s16  }
  0x34   :  { %2829 = dma.done.wait [#allocation3], 256  }
  0x35   :  { %2830 = vsyncadd [#allocation3], 4294967040 }
  0x36   :  { %2831 = dma.done.wait [#allocation6], 288  }
  0x37   :  { %2832 = vsyncadd [#allocation6], 4294967008  ;;  %vm94_vm0 = vcmask 261120   ;;  %v2981_v0 = vld [vmem:[#allocation2] sm:$0xff]  ;;  %v2983_v1 = vld [vmem:[#allocation2 + $0x8] sm:$0xff]  ;;  %v2842_v15 = vmov 0.0  }
  0x38   :  { %v95_v2 = vsel %vm94_vm0, %v2981_v0, 0.0  ;;  %v98_v3 = vsel %vm94_vm0, %v2983_v1, 0.0  ;;  %v2627_v14 = vld [vmem:[%s3432_s4] sm:$0xff]   ;;  %2405 = vmatprep.subr.bf16.mxu1 %v2842_v15  ;;  %2419 = vmatprep.subr.bf16.mxu0 %v2842_v15  ;;  %v2628_v16 = vld [vmem:[%s3432_s4 + $0x8] sm:$0xff]   ;;  %vm2843_vm1 = vmmov 0   ;;  %s2844_s18 = smov 88  }
  0x39   :  { %96 = vadd.xlane.f32.xlu0 %v95_v2  ;;  %2406 = vmatpush3.bf16.msra.mxu1 %v2627_v14  ;;  %v2246_v25 = vld [vmem:[%s3430_s2] ss:$0 sm:$0xff]  ;;  %s2845_s19 = smov 96   ;;  %s2846_s20 = smov 120   ;;  %vm216_vm2 = vcmask 64512   ;;  %v3038_v47 = vld [vmem:[#allocation5] sm:$0xff] }
  0x3a   :  { %2409 = vmatprep.mubr.msk.bf16.mxu1 %vm2843_vm1, %v2842_v15  ;;  %2407 = vmatprep.subr.bf16.mxu1 %v2842_v15  ;;  %v2247_v29 = vld [vmem:[%s3431_s3] ss:$0 sm:$0xff]  ;;  %v3040_v49 = vld [vmem:[#allocation5 + $0x8] sm:$0xff]  ;;  %vm264_vm3 = vcmask 130048   ;;  %s2847_s0 = smov 64   ;;  %s2848_s16 = smov 80  }
  0x3b   :  { %2421 = vmatprep.mubr.msk.bf16.mxu0 %vm2843_vm1, %v2842_v15  ;;  %v2248_v34 = vld [vmem:[%s3433_s5] ss:$0 sm:$0xff]  ;;  %s2849_s21 = smov 112   ;;  %s2850_s22 = smov 56   ;;  %vm461_vm4 = vcmask 1043456   ;;  %vm1110_vm7 = vcmask 523264  }
  0x3c   :  { %s2851_s24 = smov 48   ;;  %s2852_s27 = smov 104  }
  0x3d   :  { %99 = vadd.xlane.f32.xlu0 %v98_v3  ;;  %2408 = vmatpush3.bf16.msra.mxu1 %v2628_v16  ;;  %s2853_s28 = smov 72   ;;  %s2854_s17 = smov 40  }
  0x3e   :  { %2413 = vmatprep.subr.bf16.mxu1 %v2842_v15 }
  0xc6   :  { %v97_v4 = vpop.xlane.xlu0 %96 }
  0xc7   :  { %v102_v5 = vmul.f32 0.03125, %v97_v4 }
  0xc9   :  { %v104_v6 = vsub.f32 %v2981_v0, %v102_v5 }
  0xca   :  { %v100_v7 = vpop.xlane.xlu0 %99 }
  0xcb   :  { %v103_v8 = vmul.f32 0.03125, %v100_v7  ;;  %v106_v9 = vmul.f32 %v104_v6, %v104_v6 }
  0xcd   :  { %v105_v10 = vsub.f32 %v2983_v1, %v103_v8  ;;  %v108_v11 = vsel %vm94_vm0, %v106_v9, 0.0 }
  0xce   :  { %109 = vadd.xlane.f32.xlu1 %v108_v11 }
  0xcf   :  { %v107_v12 = vmul.f32 %v105_v10, %v105_v10 }
  0xd1   :  { %v111_v13 = vsel %vm94_vm0, %v107_v12, 0.0 }
  0xd2   :  { %112 = vadd.xlane.f32.xlu1 %v111_v13 }
 0x15b   :  { %v110_v17 = vpop.xlane.xlu1 %109 }
 0x15c   :  { %v114_v18 = vmul.f32 0.03125, %v110_v17 }
 0x15e   :  { %v116_v19 = vadd.f32 1e-05, %v114_v18 }
 0x15f   :  { %v113_v20 = vpop.xlane.xlu1 %112 }
 0x160   :  { %2643 = vrsqrt.f32 %v116_v19  ;;  %v115_v21 = vmul.f32 0.03125, %v113_v20 }
 0x162   :  { %v117_v22 = vadd.f32 1e-05, %v115_v21 }
 0x164   :  { %2645 = vrsqrt.f32 %v117_v22 }
 0x16a   :  { %v2644_v23 = vpop.eup %2643 }
 0x16b   :  { %v120_v24 = vmul.f32 %v2644_v23, %v104_v6 }
 0x16d   :  { %v128_v28 = vmul.f32 %v2246_v25, %v120_v24 }
 0x16e   :  { %v2646_v26 = vpop.eup %2645 }
 0x16f   :  { %v121_v27 = vmul.f32 %v2646_v26, %v105_v10  ;;  %v136_v31 = vadd.f32 %v2247_v29, %v128_v28 }
 0x171   :  { %v129_v30 = vmul.f32 %v2246_v25, %v121_v27 }
 0x173   :  { %v137_v32 = vadd.f32 %v2247_v29, %v129_v30 }
 0x175   :  { %v138_v33 = vpack.c.bf16 %v137_v32, %v136_v31 }
 0x177   :  { %2410 = vmatmul.mubr.msk.bf16.vlgmr.msra.gmra.mrb[0].mxu1 %vm94_vm0, %v138_v33 }
 0x178   :  { %2415 = vmatprep.mubr.msk.bf16.mxu1 %vm2843_vm1, %v2842_v15 }
 0x24a   :  { %v199_v35 = vpop.f32.mrb[0].mxu1 }
 0x24b   :  { %v2411_v36 = vpop.f32.mrb[1].mxu1  ;;  %v200_v38 = vadd.f32 %v2248_v34, %v199_v35 }
 0x24c   :  { %v202_v37 = vpop.f32.mrb[2].mxu1 }
 0x24d   :  { %v203_v39 = vadd.f32 %v2248_v34, %v202_v37  ;;  %v2412_v40 = vpop.f32.mrb[3].mxu1 }
 0x24e   :  { %v207_v40 = vld [vmem:[%s3434_s6] sm:$0xf] }
 0x24f   :  { %v3019_v41 = vpack.c.bf16 %v203_v39, %v200_v38 }
 0x251   :  { %338 = vrot.lane.b32.xlu1 %v3019_v41, %s2844_s18  ;;  %214 = vrot.lane.b32.xlu0 %v3019_v41, %s2845_s19 }
 0x255   :  { %336 = vrot.lane.b32.xlu1 %v3019_v41, %s2846_s20 }
 0x2c3   :  { %v215_v42 = vpop.permute.xlu0 %214  ;;  %v339_v44 = vpop.permute.xlu1 %338 }
 0x2c4   :  { %v221_v43 = vsel %vm216_vm2, %v215_v42, 0  ;;  %v344_v45 = vsel %vm216_vm2, %v339_v44, 0  ;;  %v510_v42 = vsel %vm461_vm4, %v207_v40, 0 }
 0x2c5   :  { %2414 = vmatpush3.bf16.xpose.msra.mxu1 %v221_v43  ;;  %v208_v43 = vld [vmem:[%s3434_s6 + $0x4] sm:$0xf] }
 0x2c6   :  { %2425 = vmatprep.subr.bf16.mxu1 %v2842_v15  ;;  %v463_v44 = vsel %vm461_vm4, %v208_v43, 0 }
 0x2c7   :  { %v337_v46 = vpop.permute.xlu1 %336 }
 0x2cc   :  { %2416 = vmatmul.mubr.msk.bf16.vlgmr.msra.gmra.mrb[4].mxu1 %vm216_vm2, %v3019_v41 }
 0x2cd   :  { %2426 = vmatpush3.bf16.xpose.msra.mxu1 %v344_v45  ;;  %2427 = vmatprep.mubr.msk.bf16.mxu1 %vm2843_vm1, %v2842_v15 }
 0x2ce   :  { %2437 = vmatprep.subr.bf16.mxu1 %v2842_v15 }
 0x2d4   :  { %2428 = vmatmul.mubr.msk.bf16.vlgmr.msra.gmra.mrb[8].mxu1 %vm216_vm2, %v337_v46 }
 0x2d5   :  { %2439 = vmatprep.mubr.msk.bf16.mxu1 %vm2843_vm1, %v2842_v15  ;;  %2438 = vmatpush3.bf16.msra.mxu1 %v463_v44 }
 0x2d6   :  { %2449 = vmatprep.subr.bf16.mxu1 %v2842_v15 }
 0x39f   :  { %v257_v48 = vpop.f32.mrb[4].mxu1 }
 0x3a0   :  { %v258_v50 = vadd.f32 %v257_v48, %v3038_v47  ;;  %v2417_v51 = vpop.f32.mrb[5].mxu1 }
 0x3a1   :  { %v260_v52 = vpop.f32.mrb[6].mxu1 }
 0x3a2   :  { %v261_v53 = vadd.f32 %v260_v52, %v3040_v49  ;;  %v2418_v54 = vpop.f32.mrb[7].mxu1  ;;  %v265_v55 = vsel %vm264_vm3, %v258_v50, -inf }
 0x3a3   :  { %266 = vmax.xlane.f32.xlu1 %v265_v55 }
 0x3a4   :  { %v268_v56 = vsel %vm264_vm3, %v261_v53, -inf }
 0x3a5   :  { %269 = vmax.xlane.f32.xlu0 %v268_v56 }
 0x3a7   :  { %v380_v57 = vpop.f32.mrb[8].mxu1 }
 0x3a8   :  { %v381_v58 = vadd.f32 %v380_v57, %v3038_v47  ;;  %v2429_v59 = vpop.f32.mrb[9].mxu1 }
 0x3a9   :  { %v383_v60 = vpop.f32.mrb[10].mxu1 }
 0x3aa   :  { %v384_v61 = vadd.f32 %v383_v60, %v3040_v49  ;;  %v2430_v62 = vpop.f32.mrb[11].mxu1  ;;  %v387_v63 = vsel %vm264_vm3, %v381_v58, -inf }
 0x3ab   :  { %388 = vmax.xlane.f32.xlu0 %v387_v63 }
 0x3ac   :  { %v390_v2 = vsel %vm264_vm3, %v384_v61, -inf }
 0x3af   :  { %391 = vmax.xlane.f32.xlu0 %v390_v2 }
 0x430   :  { %v267_v3 = vpop.xlane.xlu1 %266 }
 0x431   :  { %v271_v4 = vsub.f32 %v258_v50, %v267_v3 }
 0x432   :  { %v270_v5 = vpop.xlane.xlu0 %269 }
 0x433   :  { %v273_v6 = vmul.f32 1.442695, %v271_v4  ;;  %v272_v7 = vsub.f32 %v261_v53, %v270_v5 }
 0x435   :  { %2647 = vpow2.f32 %v273_v6  ;;  %v275_v8 = vmul.f32 1.442695, %v272_v7 }
 0x437   :  { %2649 = vpow2.f32 %v275_v8 }
 0x438   :  { %v389_v9 = vpop.xlane.xlu0 %388 }
 0x439   :  { %v393_v10 = vsub.f32 %v381_v58, %v389_v9 }
 0x43b   :  { %v395_v11 = vmul.f32 1.442695, %v393_v10 }
 0x43c   :  { %v392_v12 = vpop.xlane.xlu0 %391 }
 0x43d   :  { %2651 = vpow2.f32 %v395_v11  ;;  %v394_v13 = vsub.f32 %v384_v61, %v392_v12 }
 0x43f   :  { %v2648_v14 = vpop.eup %2647  ;;  %v397_v16 = vmul.f32 1.442695, %v394_v13 }
 0x440   :  { %v277_v17 = vsel %vm264_vm3, %v2648_v14, 0.0 }
 0x441   :  { %v2650_v18 = vpop.eup %2649  ;;  %2653 = vpow2.f32 %v397_v16  ;;  %278 = vadd.xlane.f32.xlu1 %v277_v17 }
 0x442   :  { %v280_v19 = vsel %vm264_vm3, %v2650_v18, 0.0 }
 0x443   :  { %281 = vadd.xlane.f32.xlu0 %v280_v19 }
 0x447   :  { %v2652_v20 = vpop.eup %2651 }
 0x448   :  { %v399_v21 = vsel %vm264_vm3, %v2652_v20, 0.0 }
 0x449   :  { %400 = vadd.xlane.f32.xlu1 %v399_v21 }
 0x44b   :  { %v2654_v22 = vpop.eup %2653 }
 0x44c   :  { %v402_v23 = vsel %vm264_vm3, %v2654_v22, 0.0 }
 0x44d   :  { %403 = vadd.xlane.f32.xlu0 %v402_v23 }
 0x45a   :  { %288 = vrot.lane.b32.xlu1 %v3019_v41, %s2847_s0 }
 0x45e   :  { %555 = vrot.lane.b32.xlu1 %v3019_v41, %s2848_s16 }
 0x462   :  { %553 = vrot.lane.b32.xlu1 %v3019_v41, %s2849_s21 }
 0x463   :  { %410 = vrot.lane.b32.xlu0 %v3019_v41, %s2850_s22 }
 0x4ce   :  { %v279_v24 = vpop.xlane.xlu1 %278 }
 0x4cf   :  { %2655 = vrcp.f32 %v279_v24 }
 0x4d0   :  { %v282_v25 = vpop.xlane.xlu0 %281 }
 0x4d1   :  { %2657 = vrcp.f32 %v282_v25 }
 0x4d6   :  { %v401_v26 = vpop.xlane.xlu1 %400 }
 0x4d7   :  { %2659 = vrcp.f32 %v401_v26 }
 0x4d9   :  { %v2656_v27 = vpop.eup %2655 }
 0x4da   :  { %v289_v28 = vpop.permute.xlu1 %288  ;;  %v404_v29 = vpop.xlane.xlu0 %403  ;;  %v285_v31 = vmul.f32 %v2656_v27, %v2648_v14 }
 0x4db   :  { %v2658_v30 = vpop.eup %2657  ;;  %2661 = vrcp.f32 %v404_v29  ;;  %2420 = vmatpush3.bf16.msra.mxu0 %v289_v28 }
 0x4dc   :  { %2431 = vmatprep.subr.bf16.mxu0 %v2842_v15  ;;  %v286_v32 = vmul.f32 %v2658_v30, %v2650_v18 }
 0x4de   :  { %v411_v33 = vpop.permute.xlu0 %410  ;;  %v287_v34 = vpack.c.bf16 %v286_v32, %v285_v31  ;;  %v556_v54 = vpop.permute.xlu1 %555 }
 0x4df   :  { %v561_v58 = vsel %vm216_vm2, %v556_v54, 0 }
 0x4e0   :  { %2422 = vmatmul.mubr.msk.bf16.vlgmr.msra.gmra.mrb[0].mxu0 %vm264_vm3, %v287_v34 }
 0x4e1   :  { %2432 = vmatpush3.bf16.msra.mxu0 %v411_v33  ;;  %2433 = vmatprep.mubr.msk.bf16.mxu0 %vm2843_vm1, %v2842_v15  ;;  %v2660_v35 = vpop.eup %2659 }
 0x4e2   :  { %2443 = vmatprep.subr.bf16.mxu0 %v2842_v15  ;;  %v407_v37 = vmul.f32 %v2660_v35, %v2652_v20  ;;  %v554_v59 = vpop.permute.xlu1 %553 }
 0x4e5   :  { %v2662_v36 = vpop.eup %2661 }
 0x4e6   :  { %v408_v38 = vmul.f32 %v2662_v36, %v2654_v22 }
 0x4e8   :  { %v409_v39 = vpack.c.bf16 %v408_v38, %v407_v37  ;;  %v209_v38 = vld [vmem:[%s3434_s6 + $0x8] sm:$0xf] }
 0x4ea   :  { %2434 = vmatmul.mubr.msk.bf16.vlgmr.msra.gmra.mrb[4].mxu0 %vm264_vm3, %v409_v39  ;;  %v679_v39 = vsel %vm461_vm4, %v209_v38, 0 }
 0x4eb   :  { %2445 = vmatprep.mubr.msk.bf16.mxu0 %vm2843_vm1, %v2842_v15  ;;  %2444 = vmatpush3.bf16.msra.mxu0 %v510_v42 }
 0x4ec   :  { %2455 = vmatprep.subr.bf16.mxu0 %v2842_v15 }
 0x5b3   :  { %v328_v45 = vpop.f32.mrb[0].mxu0 }
 0x5b4   :  { %v2423_v46 = vpop.f32.mrb[1].mxu0 }
 0x5b5   :  { %v331_v48 = vpop.f32.mrb[2].mxu0 }
 0x5b6   :  { %v335_v50 = vpack.c.bf16 %v331_v48, %v328_v45  ;;  %v2424_v51 = vpop.f32.mrb[3].mxu0 }
 0x5b8   :  { %2446 = vmatmul.mubr.msk.bf16.vlgmr.msra.gmra.mrb[8].mxu0 %vm216_vm2, %v335_v50 }
 0x5b9   :  { %2457 = vmatprep.mubr.msk.bf16.mxu0 %vm2843_vm1, %v2842_v15 }
 0x5bd   :  { %v450_v52 = vpop.f32.mrb[4].mxu0 }
 0x5be   :  { %v2435_v53 = vpop.f32.mrb[5].mxu0 }
 0x5bf   :  { %v453_v55 = vpop.f32.mrb[6].mxu0 }
 0x5c0   :  { %v457_v56 = vpack.c.bf16 %v453_v55, %v450_v52  ;;  %v2436_v57 = vpop.f32.mrb[7].mxu0 }
 0x5c2   :  { %2440 = vmatmul.mubr.msk.bf16.vlgmr.msra.gmra.mrb[12].mxu1 %vm216_vm2, %v457_v56 }
 0x5c3   :  { %2450 = vmatpush3.bf16.xpose.msra.mxu1 %v561_v58  ;;  %2451 = vmatprep.mubr.msk.bf16.mxu1 %vm2843_vm1, %v2842_v15 }
 0x5c4   :  { %2461 = vmatprep.subr.bf16.mxu1 %v2842_v15 }
 0x5ca   :  { %2452 = vmatmul.mubr.msk.bf16.vlgmr.msra.gmra.mrb[16].mxu1 %vm216_vm2, %v554_v59 }
 0x5cb   :  { %2463 = vmatprep.mubr.msk.bf16.mxu1 %vm2843_vm1, %v2842_v15  ;;  %2462 = vmatpush3.bf16.msra.mxu1 %v679_v39 }
 0x5cc   :  { %2473 = vmatprep.subr.bf16.mxu1 %v2842_v15 }
 0x68b   :  { %v546_v60 = vpop.f32.mrb[8].mxu0 }
 0x68c   :  { %v2447_v61 = vpop.f32.mrb[9].mxu0 }
 0x68d   :  { %v549_v62 = vpop.f32.mrb[10].mxu0 }
 0x68e   :  { %v2448_v63 = vpop.f32.mrb[11].mxu0 }
 0x695   :  { %v499_v2 = vpop.f32.mrb[12].mxu1 }
 0x696   :  { %v3091_v3 = vadd.f32 %v546_v60, %v499_v2  ;;  %v2441_v4 = vpop.f32.mrb[13].mxu1 }
 0x697   :  { %v502_v5 = vpop.f32.mrb[14].mxu1 }
 0x698   :  { %v3093_v6 = vadd.f32 %v549_v62, %v502_v5  ;;  %v2442_v7 = vpop.f32.mrb[15].mxu1 }
 0x69d   :  { %v597_v8 = vpop.f32.mrb[16].mxu1 }
 0x69e   :  { %v598_v9 = vadd.f32 %v597_v8, %v3038_v47  ;;  %v2453_v10 = vpop.f32.mrb[17].mxu1 }
 0x69f   :  { %v600_v11 = vpop.f32.mrb[18].mxu1 }
 0x6a0   :  { %v601_v12 = vadd.f32 %v600_v11, %v3040_v49  ;;  %v2454_v13 = vpop.f32.mrb[19].mxu1  ;;  %v604_v14 = vsel %vm264_vm3, %v598_v9, -inf }
 0x6a1   :  { %605 = vmax.xlane.f32.xlu1 %v604_v14 }
 0x6a2   :  { %v607_v16 = vsel %vm264_vm3, %v601_v12, -inf }
 0x6a3   :  { %608 = vmax.xlane.f32.xlu0 %v607_v16 }
 0x6b2   :  { %627 = vrot.lane.b32.xlu1 %v3019_v41, %s2851_s24 }
 0x6b6   :  { %724 = vrot.lane.b32.xlu1 %v3019_v41, %s2852_s27 }
 0x72e   :  { %v606_v17 = vpop.xlane.xlu1 %605 }
 0x72f   :  { %v610_v18 = vsub.f32 %v598_v9, %v606_v17 }
 0x730   :  { %v609_v19 = vpop.xlane.xlu0 %608 }
 0x731   :  { %v612_v20 = vmul.f32 1.442695, %v610_v18  ;;  %v611_v21 = vsub.f32 %v601_v12, %v609_v19 }
 0x732   :  { %v628_v22 = vpop.permute.xlu1 %627 }
 0x733   :  { %2663 = vpow2.f32 %v612_v20  ;;  %v614_v23 = vmul.f32 1.442695, %v611_v21  ;;  %2456 = vmatpush3.bf16.msra.mxu0 %v628_v22 }
 0x734   :  { %2467 = vmatprep.subr.bf16.mxu0 %v2842_v15 }
 0x735   :  { %2665 = vpow2.f32 %v614_v23 }
 0x736   :  { %v725_v37 = vpop.permute.xlu1 %724 }
 0x73d   :  { %v2664_v24 = vpop.eup %2663 }
 0x73e   :  { %v616_v25 = vsel %vm264_vm3, %v2664_v24, 0.0 }
 0x73f   :  { %v2666_v26 = vpop.eup %2665  ;;  %617 = vadd.xlane.f32.xlu0 %v616_v25 }
 0x740   :  { %v619_v27 = vsel %vm264_vm3, %v2666_v26, 0.0 }
 0x743   :  { %620 = vadd.xlane.f32.xlu0 %v619_v27 }
 0x759   :  { %726 = vrot.lane.b32.xlu0 %v3019_v41, %s2853_s28 }
 0x7cc   :  { %v618_v28 = vpop.xlane.xlu0 %617 }
 0x7cd   :  { %2667 = vrcp.f32 %v618_v28  ;;  %v2264_v28 = vld [vmem:[%s3435_s7] ss:$0 sm:$0xff] }
 0x7d0   :  { %v621_v29 = vpop.xlane.xlu0 %620 }
 0x7d1   :  { %2669 = vrcp.f32 %v621_v29 }
 0x7d4   :  { %v727_v34 = vpop.permute.xlu0 %726 }
 0x7d5   :  { %v732_v36 = vsel %vm216_vm2, %v727_v34, 0 }
 0x7d7   :  { %v2668_v30 = vpop.eup %2667 }
 0x7d8   :  { %v624_v32 = vmul.f32 %v2668_v30, %v2664_v24 }
 0x7db   :  { %v2670_v31 = vpop.eup %2669 }
 0x7dc   :  { %v625_v33 = vmul.f32 %v2670_v31, %v2666_v26 }
 0x7de   :  { %v626_v35 = vpack.c.bf16 %v625_v33, %v624_v32 }
 0x7e0   :  { %2458 = vmatmul.mubr.msk.bf16.vlgmr.msra.gmra.mrb[12].mxu0 %vm264_vm3, %v626_v35 }
 0x7e1   :  { %2468 = vmatpush3.bf16.xpose.msra.mxu0 %v732_v36  ;;  %2469 = vmatprep.mubr.msk.bf16.mxu0 %vm2843_vm1, %v2842_v15 }
 0x7e2   :  { %2479 = vmatprep.subr.bf16.mxu0 %v2842_v15 }
 0x7e8   :  { %2470 = vmatmul.mubr.msk.bf16.vlgmr.msra.gmra.mrb[16].mxu0 %vm216_vm2, %v725_v37 }
 0x7e9   :  { %2481 = vmatprep.mubr.msk.bf16.mxu0 %vm2843_vm1, %v2842_v15 }
 0x8b3   :  { %v667_v40 = vpop.f32.mrb[12].mxu0 }
 0x8b4   :  { %v2459_v42 = vpop.f32.mrb[13].mxu0 }
 0x8b5   :  { %v670_v43 = vpop.f32.mrb[14].mxu0 }
 0x8b6   :  { %v674_v44 = vpack.c.bf16 %v670_v43, %v667_v40  ;;  %v2460_v45 = vpop.f32.mrb[15].mxu0 }
 0x8b8   :  { %2464 = vmatmul.mubr.msk.bf16.vlgmr.msra.gmra.mrb[20].mxu1 %vm216_vm2, %v674_v44 }
 0x8b9   :  { %2475 = vmatprep.mubr.msk.bf16.mxu1 %vm2843_vm1, %v2842_v15 }
 0x8bb   :  { %v768_v46 = vpop.f32.mrb[16].mxu0 }
 0x8bc   :  { %v769_v48 = vadd.f32 %v768_v46, %v3038_v47  ;;  %v2471_v50 = vpop.f32.mrb[17].mxu0 }
 0x8bd   :  { %v771_v51 = vpop.f32.mrb[18].mxu0  ;;  %v2630_v50 = vld [vmem:[%s3438_s10 + $0x8] sm:$0xff]  }
 0x8be   :  { %v772_v52 = vadd.f32 %v771_v51, %v3040_v49  ;;  %v2472_v53 = vpop.f32.mrb[19].mxu0  ;;  %v775_v54 = vsel %vm264_vm3, %v769_v48, -inf }
 0x8bf   :  { %776 = vmax.xlane.f32.xlu1 %v775_v54 }
 0x8c0   :  { %v778_v55 = vsel %vm264_vm3, %v772_v52, -inf }
 0x8c1   :  { %779 = vmax.xlane.f32.xlu0 %v778_v55 }
 0x94c   :  { %v777_v56 = vpop.xlane.xlu1 %776 }
 0x94d   :  { %v781_v57 = vsub.f32 %v769_v48, %v777_v56  ;;  %v2629_v48 = vld [vmem:[%s3438_s10] sm:$0xff]  }
 0x94e   :  { %v780_v58 = vpop.xlane.xlu0 %779 }
 0x94f   :  { %v783_v59 = vmul.f32 1.442695, %v781_v57  ;;  %v782_v60 = vsub.f32 %v772_v52, %v780_v58 }
 0x951   :  { %2671 = vpow2.f32 %v783_v59  ;;  %v785_v61 = vmul.f32 1.442695, %v782_v60  ;;  %v2265_v59 = vld [vmem:[%s3436_s8] ss:$0 sm:$0xff] }
 0x953   :  { %2673 = vpow2.f32 %v785_v61 }
 0x95b   :  { %v2672_v62 = vpop.eup %2671 }
 0x95c   :  { %v787_v63 = vsel %vm264_vm3, %v2672_v62, 0.0 }
 0x95d   :  { %v2674_v2 = vpop.eup %2673  ;;  %788 = vadd.xlane.f32.xlu0 %v787_v63  ;;  %v2266_v63 = vld [vmem:[%s3437_s9] ss:$0 sm:$0xff] }
 0x95e   :  { %v790_v4 = vsel %vm264_vm3, %v2674_v2, 0.0 }
 0x95f   :  { %791 = vadd.xlane.f32.xlu1 %v790_v4 }
 0x973   :  { %798 = vrot.lane.b32.xlu0 %v3019_v41, %s2854_s17 }
 0x98b   :  { %v715_v5 = vpop.f32.mrb[20].mxu1 }
 0x98c   :  { %v722_v7 = vadd.f32 %v715_v5, %v3091_v3  ;;  %v2465_v8 = vpop.f32.mrb[21].mxu1  ;;  %v210_v3 = vld [vmem:[%s3434_s6 + $0xc] sm:$0xf] }
 0x98d   :  { %v718_v9 = vpop.f32.mrb[22].mxu1  ;;  %v2631_v8 = vld [vmem:[%s3440_s12] sm:$0xff]  }
 0x98e   :  { %v723_v10 = vadd.f32 %v718_v9, %v3093_v6  ;;  %v2466_v11 = vpop.f32.mrb[23].mxu1  ;;  %v850_v6 = vsel %vm461_vm4, %v210_v3, 0  ;;  %v2632_v9 = vld [vmem:[%s3440_s12 + $0x8] sm:$0xff]  }
 0x98f   :  { %2480 = vmatpush3.bf16.msra.mxu0 %v850_v6  ;;  %v2634_v11 = vld [vmem:[%s3440_s12 + $0x18] sm:$0xff]  }
 0x990   :  { %2493 = vmatprep.subr.bf16.mxu0 %v2842_v15 }
 0x9ea   :  { %v789_v12 = vpop.xlane.xlu0 %788 }
 0x9eb   :  { %2675 = vrcp.f32 %v789_v12  ;;  %v2267_v12 = vld [vmem:[#allocation7] ss:$0 sm:$0xff] }
 0x9ec   :  { %v792_v13 = vpop.xlane.xlu1 %791 }
 0x9ed   :  { %2677 = vrcp.f32 %v792_v13 }
 0x9ee   :  { %v799_v14 = vpop.permute.xlu0 %798 }
 0x9ef   :  { %2474 = vmatpush3.bf16.msra.mxu1 %v799_v14 }
 0x9f0   :  { %2485 = vmatprep.subr.bf16.mxu1 %v2842_v15 }
 0x9f5   :  { %v2676_v16 = vpop.eup %2675 }
 0x9f6   :  { %v795_v18 = vmul.f32 %v2676_v16, %v2672_v62 }
 0x9f7   :  { %v2678_v17 = vpop.eup %2677 }
 0x9f8   :  { %v796_v41 = vmul.f32 %v2678_v17, %v2674_v2 }
 0x9fa   :  { %v797_v19 = vpack.c.bf16 %v796_v41, %v795_v18 }
 0x9fc   :  { %2476 = vmatmul.mubr.msk.bf16.vlgmr.msra.gmra.mrb[24].mxu1 %vm264_vm3, %v797_v19 }
 0x9fd   :  { %2489 = vmatprep.mubr.msk.bf16.mxu1 %vm2843_vm1, %v2842_v15  ;;  %2486 = vmatpush3.bf16.msra.mxu1 %v2629_v48 }
 0x9fe   :  { %2487 = vmatprep.subr.bf16.mxu1 %v2842_v15 }
 0xa01   :  { %2488 = vmatpush3.bf16.msra.mxu1 %v2630_v50 }
 0xa02   :  { %2505 = vmatprep.subr.bf16.mxu1 %v2842_v15 }
 0xacf   :  { %v838_v20 = vpop.f32.mrb[24].mxu1 }
 0xad0   :  { %v2477_v21 = vpop.f32.mrb[25].mxu1 }
 0xad1   :  { %v841_v22 = vpop.f32.mrb[26].mxu1 }
 0xad2   :  { %v845_v23 = vpack.c.bf16 %v841_v22, %v838_v20  ;;  %v2478_v24 = vpop.f32.mrb[27].mxu1 }
 0xad4   :  { %2482 = vmatmul.mubr.msk.bf16.vlgmr.msra.gmra.mrb[20].mxu0 %vm216_vm2, %v845_v23 }
 0xad5   :  { %2501 = vmatprep.mubr.msk.bf16.mxu0 %vm2843_vm1, %v2842_v15  ;;  %2494 = vmatpush3.bf16.msra.mxu0 %v2631_v8 }
 0xad6   :  { %2495 = vmatprep.subr.bf16.mxu0 %v2842_v15 }
 0xad9   :  { %2496 = vmatpush3.bf16.msra.mxu0 %v2632_v9 }
 0xada   :  { %2497 = vmatprep.subr.bf16.mxu0 %v2842_v15 }
 0xba7   :  { %v886_v25 = vpop.f32.mrb[20].mxu0 }
 0xba8   :  { %v893_v26 = vadd.f32 %v886_v25, %v722_v7  ;;  %v2483_v27 = vpop.f32.mrb[21].mxu0 }
 0xba9   :  { %v889_v29 = vpop.f32.mrb[22].mxu0 }
 0xbaa   :  { %v895_v30 = vadd.f32 %v893_v26, %v2981_v0  ;;  %v894_v31 = vadd.f32 %v889_v29, %v723_v10  ;;  %v2484_v32 = vpop.f32.mrb[23].mxu0  ;;  %v2633_v10 = vld [vmem:[%s3440_s12 + $0x10] sm:$0xff]  }
 0xbab   :  { %2498 = vmatpush3.bf16.msra.mxu0 %v2633_v10 }
 0xbac   :  { %v3150_v33 = vadd.f32 %v2264_v28, %v895_v30  ;;  %v896_v34 = vadd.f32 %v894_v31, %v2983_v1  ;;  %2499 = vmatprep.subr.bf16.mxu0 %v2842_v15 }
 0xbae   :  { %v3153_v35 = vadd.f32 %v2264_v28, %v896_v34  ;;  %v908_v36 = vsel %vm94_vm0, %v3150_v33, 0.0 }
 0xbaf   :  { %909 = vadd.xlane.f32.xlu1 %v908_v36  ;;  %2500 = vmatpush3.bf16.msra.mxu0 %v2634_v11 }
 0xbb0   :  { %v911_v37 = vsel %vm94_vm0, %v3153_v35, 0.0  ;;  %2519 = vmatprep.subr.bf16.mxu0 %v2842_v15 }
 0xbb3   :  { %912 = vadd.xlane.f32.xlu1 %v911_v37 }
 0xc3c   :  { %v910_v38 = vpop.xlane.xlu1 %909 }
 0xc3d   :  { %v914_v39 = vmul.f32 0.03125, %v910_v38 }
 0xc3f   :  { %v916_v0 = vsub.f32 %v3150_v33, %v914_v39 }
 0xc40   :  { %v913_v40 = vpop.xlane.xlu1 %912 }
 0xc41   :  { %v915_v42 = vmul.f32 0.03125, %v913_v40  ;;  %v918_v43 = vmul.f32 %v916_v0, %v916_v0 }
 0xc43   :  { %v917_v44 = vsub.f32 %v3153_v35, %v915_v42  ;;  %v920_v1 = vsel %vm94_vm0, %v918_v43, 0.0 }
 0xc44   :  { %921 = vadd.xlane.f32.xlu1 %v920_v1 }
 0xc45   :  { %v919_v45 = vmul.f32 %v917_v44, %v917_v44 }
 0xc47   :  { %v923_v46 = vsel %vm94_vm0, %v919_v45, 0.0 }
 0xc48   :  { %924 = vadd.xlane.f32.xlu1 %v923_v46 }
 0xcd1   :  { %v922_v51 = vpop.xlane.xlu1 %921 }
 0xcd2   :  { %v926_v52 = vmul.f32 0.03125, %v922_v51 }
 0xcd4   :  { %v928_v53 = vadd.f32 1e-05, %v926_v52 }
 0xcd5   :  { %v925_v54 = vpop.xlane.xlu1 %924 }
 0xcd6   :  { %2679 = vrsqrt.f32 %v928_v53  ;;  %v927_v55 = vmul.f32 0.03125, %v925_v54 }
 0xcd8   :  { %v929_v56 = vadd.f32 1e-05, %v927_v55 }
 0xcda   :  { %2681 = vrsqrt.f32 %v929_v56 }
 0xce0   :  { %v2680_v57 = vpop.eup %2679 }
 0xce1   :  { %v932_v58 = vmul.f32 %v2680_v57, %v916_v0 }
 0xce3   :  { %v940_v61 = vmul.f32 %v2265_v59, %v932_v58  ;;  %v2855_v58 = vmov 1.0  }
 0xce4   :  { %v2682_v60 = vpop.eup %2681 }
 0xce5   :  { %v933_v62 = vmul.f32 %v2682_v60, %v917_v44  ;;  %v948_v4 = vadd.f32 %v2266_v63, %v940_v61 }
 0xce7   :  { %v941_v2 = vmul.f32 %v2265_v59, %v933_v62 }
 0xce9   :  { %v949_v5 = vadd.f32 %v2266_v63, %v941_v2 }
 0xceb   :  { %v950_v7 = vpack.c.bf16 %v949_v5, %v948_v4 }
 0xced   :  { %2490 = vmatmul.mubr.msk.bf16.vlgmr.msra.gmra.mrb[28].mxu1 %vm94_vm0, %v950_v7 }
 0xcee   :  { %2509 = vmatprep.mubr.msk.bf16.mxu1 %vm2843_vm1, %v2842_v15 }
 0xdc0   :  { %v1011_v13 = vpop.f32.mrb[28].mxu1 }
 0xdc1   :  { %v1012_v14 = vadd.f32 %v2267_v12, %v1011_v13  ;;  %v2491_v16 = vpop.f32.mrb[29].mxu1 }
 0xdc2   :  { %v1014_v17 = vpop.f32.mrb[30].mxu1 }
 0xdc3   :  { %v1020_v18 = vmul.f32 0.70710677, %v1012_v14  ;;  %v1015_v41 = vadd.f32 %v2267_v12, %v1014_v17  ;;  %v2492_v19 = vpop.f32.mrb[31].mxu1  ;;  %v1018_v5 = vmul.f32 0.5, %v1012_v14  ;;  %v2271_v12 = vld [vmem:[%s3441_s13] ss:$0 sm:$0xff] }
 0xdc5   :  { %v1026_v3 = vand.u32 2147483647, %v1020_v18  ;;  %v1021_v6 = vmul.f32 0.70710677, %v1015_v41  ;;  %vm1022_vm5 = vcmp.lt.f32.partialorder %v1020_v18, 0.0  ;;  %v1019_v7 = vmul.f32 0.5, %v1015_v41 }
 0xdc6   :  { %v1024_v59 = vsel %vm1022_vm5, -1.0, %v2855_v58 }
 0xdc7   :  { %v1028_v20 = vmul.f32 0.3275911, %v1026_v3  ;;  %v1027_v21 = vand.u32 2147483647, %v1021_v6  ;;  %v1052_v25 = vsub.f32 0.0, %v1026_v3  ;;  %vm1023_vm6 = vcmp.lt.f32.partialorder %v1021_v6, 0.0 }
 0xdc8   :  { %v1025_v63 = vsel %vm1023_vm6, -1.0, %v2855_v58 }
 0xdc9   :  { %v1030_v22 = vadd.f32 1.0, %v1028_v20  ;;  %v1029_v23 = vmul.f32 0.3275911, %v1027_v21  ;;  %v1053_v26 = vsub.f32 0.0, %v1027_v21  ;;  %v1054_v28 = vmul.f32 %v1052_v25, %v1026_v3 }
 0xdcb   :  { %2683 = vrcp.f32 %v1030_v22  ;;  %v1031_v24 = vadd.f32 1.0, %v1029_v23  ;;  %v1055_v32 = vmul.f32 %v1053_v26, %v1027_v21  ;;  %v1056_v34 = vmul.f32 1.442695, %v1054_v28 }
 0xdcd   :  { %2685 = vrcp.f32 %v1031_v24  ;;  %v1058_v0 = vmul.f32 1.442695, %v1055_v32 }
 0xdce   :  { %2687 = vpow2.f32 %v1056_v34 }
 0xdcf   :  { %2689 = vpow2.f32 %v1058_v0 }
 0xdd5   :  { %v2684_v27 = vpop.eup %2683 }
 0xdd6   :  { %v1034_v29 = vmul.f32 1.0614054, %v2684_v27 }
 0xdd7   :  { %v2686_v30 = vpop.eup %2685 }
 0xdd8   :  { %v1036_v31 = vadd.f32 -1.4531521, %v1034_v29  ;;  %v1035_v36 = vmul.f32 1.0614054, %v2686_v30  ;;  %v2688_v52 = vpop.eup %2687  ;;  %v2635_v29 = vld [vmem:[%s3432_s4 + $0x10] sm:$0xff]  }
 0xdd9   :  { %v2690_v56 = vpop.eup %2689  ;;  %2506 = vmatpush3.bf16.msra.mxu1 %v2635_v29 }
 0xdda   :  { %v1038_v37 = vmul.f32 %v2684_v27, %v1036_v31  ;;  %v1037_v38 = vadd.f32 -1.4531521, %v1035_v36  ;;  %2507 = vmatprep.subr.bf16.mxu1 %v2842_v15 }
 0xddc   :  { %v1040_v39 = vadd.f32 1.4214138, %v1038_v37  ;;  %v1039_v40 = vmul.f32 %v2686_v30, %v1037_v38 }
 0xdde   :  { %v1042_v42 = vmul.f32 %v2684_v27, %v1040_v39  ;;  %v1041_v43 = vadd.f32 1.4214138, %v1039_v40  ;;  %v2279_v40 = vld [vmem:[%s3430_s2 + $0x1] ss:$0 sm:$0xff]  ;;  %s2856_s2 = smov [#allocation8]  }
 0xde0   :  { %v1044_v44 = vadd.f32 -0.28449672, %v1042_v42  ;;  %v1043_v1 = vmul.f32 %v2686_v30, %v1041_v43 }
 0xde2   :  { %v1046_v45 = vmul.f32 %v2684_v27, %v1044_v44  ;;  %v1045_v46 = vadd.f32 -0.28449672, %v1043_v1  ;;  %v2280_v1 = vld [vmem:[%s3431_s3 + $0x1] ss:$0 sm:$0xff]  ;;  %s2233_s3 = sshll.u32 %s2856_s2, 4  ;;  %s2234_s3 = int_to_ptr.vmem [resolvable:$true] %s2233_s3 }
 0xde3   :  { %p2812_p11 = scmp.lt.s32.totalorder %s2234_s3, %s2234_s3 }
 0xde4   :  { %v1048_v48 = vadd.f32 0.2548296, %v1046_v45  ;;  %v1047_v50 = vmul.f32 %v2686_v30, %v1045_v46 }
 0xde6   :  { %v1050_v51 = vmul.f32 %v2684_v27, %v1048_v48  ;;  %v1049_v53 = vadd.f32 0.2548296, %v1047_v50 }
 0xde8   :  { %v1060_v54 = vmul.f32 %v2688_v52, %v1050_v51  ;;  %v1051_v55 = vmul.f32 %v2686_v30, %v1049_v53  ;;  %v2636_v30 = vld [vmem:[%s3432_s4 + $0x18] sm:$0xff]   ;;  %v2286_v51 = vld [vmem:[%s3433_s5 + $0x1] ss:$0 sm:$0xff]  ;;  %s2807_s5 = scalar_lea.vmem %s2234_s3, 256 }
 0xde9   :  { %2508 = vmatpush3.bf16.msra.mxu1 %v2636_v30  ;;  %p2808_p10 = scmp.ne.s32.totalorder %s2234_s3, %s2807_s5  ;;  %p2813_p12 = scmp.lt.s32.totalorder %s2807_s5, %s2807_s5 }
 0xdea   :  { %v1062_v57 = vsub.f32 1.0, %v1060_v54  ;;  %v1061_v60 = vmul.f32 %v2690_v56, %v1051_v55  ;;  %2513 = vmatprep.subr.bf16.mxu1 %v2842_v15 }
 0xdeb   :  { %p2814_p13 = por %p2813_p12, %p2812_p11 }
 0xdec   :  { %v1064_v61 = vmul.f32 %v1062_v57, %v1024_v59  ;;  %v1063_v62 = vsub.f32 1.0, %v1061_v60 }
 0xded   :  { %p2815_p0 = pnand %p2814_p13, %p2808_p10 }
 0xdee   :  { %v1066_v2 = vadd.f32 1.0, %v1064_v61  ;;  %v1065_v4 = vmul.f32 %v1063_v62, %v1025_v63 }
 0xdf0   :  { %v1067_v8 = vadd.f32 1.0, %v1065_v4  ;;  %v1068_v9 = vmul.f32 %v1066_v2, %v1018_v5 }
 0xdf2   :  { %v1069_v10 = vmul.f32 %v1067_v8, %v1019_v7 }
 0xdf4   :  { %v1070_v11 = vpack.c.bf16 %v1069_v10, %v1068_v9 }
 0xdf6   :  { %2502 = vmatmul.mubr.msk.bf16.vlgmr.msra.gmra.mrb[24].mxu0 %vm1110_vm7, %v1070_v11 }
 0xdf7   :  { %2521 = vmatprep.mubr.msk.bf16.mxu0 %vm2843_vm1, %v2842_v15 }
 0xec9   :  { %v1148_v13 = vpop.f32.mrb[24].mxu0 }
 0xeca   :  { %v1149_v16 = vadd.f32 %v2271_v12, %v1148_v13  ;;  %v2503_v17 = vpop.f32.mrb[25].mxu0 }
 0xecb   :  { %v1151_v18 = vpop.f32.mrb[26].mxu0 }
 0xecc   :  { %v3205_v14 = vadd.f32 %v1149_v16, %v3150_v33  ;;  %v1152_v41 = vadd.f32 %v2271_v12, %v1151_v18  ;;  %v2504_v19 = vpop.f32.mrb[27].mxu0 }
 0xece   :  { %v3208_v3 = vadd.f32 %v1152_v41, %v3153_v35  ;;  %v1161_v6 = vsel %vm94_vm0, %v3205_v14, 0.0 }
 0xecf   :  { %1162 = vadd.xlane.f32.xlu1 %v1161_v6 }
 0xed0   :  { %v1164_v20 = vsel %vm94_vm0, %v3208_v3, 0.0 }
 0xed3   :  { %1165 = vadd.xlane.f32.xlu1 %v1164_v20 }
 0xf5c   :  { %v1163_v21 = vpop.xlane.xlu1 %1162 }
 0xf5d   :  { %v1167_v22 = vmul.f32 0.03125, %v1163_v21 }
 0xf5f   :  { %v1169_v23 = vsub.f32 %v3205_v14, %v1167_v22 }
 0xf60   :  { %v1166_v24 = vpop.xlane.xlu1 %1165 }
 0xf61   :  { %v1168_v33 = vmul.f32 0.03125, %v1166_v24  ;;  %v1171_v25 = vmul.f32 %v1169_v23, %v1169_v23 }
 0xf63   :  { %v1170_v26 = vsub.f32 %v3208_v3, %v1168_v33  ;;  %v1173_v35 = vsel %vm94_vm0, %v1171_v25, 0.0 }
 0xf64   :  { %1174 = vadd.xlane.f32.xlu0 %v1173_v35 }
 0xf65   :  { %v1172_v27 = vmul.f32 %v1170_v26, %v1170_v26 }
 0xf67   :  { %v1176_v28 = vsel %vm94_vm0, %v1172_v27, 0.0 }
 0xf68   :  { %1177 = vadd.xlane.f32.xlu1 %v1176_v28 }
 0xff1   :  { %v1175_v31 = vpop.xlane.xlu0 %1174 }
 0xff2   :  { %v1179_v32 = vmul.f32 0.03125, %v1175_v31 }
 0xff4   :  { %v1181_v34 = vadd.f32 1e-05, %v1179_v32 }
 0xff5   :  { %v1178_v36 = vpop.xlane.xlu1 %1177 }
 0xff6   :  { %2691 = vrsqrt.f32 %v1181_v34  ;;  %v1180_v37 = vmul.f32 0.03125, %v1178_v36 }
 0xff8   :  { %v1182_v38 = vadd.f32 1e-05, %v1180_v37 }
 0xffa   :  { %2693 = vrsqrt.f32 %v1182_v38 }
0x1000   :  { %v2692_v39 = vpop.eup %2691 }
0x1001   :  { %v1185_v0 = vmul.f32 %v2692_v39, %v1169_v23 }
0x1003   :  { %v1193_v43 = vmul.f32 %v2279_v40, %v1185_v0 }
0x1004   :  { %v2694_v42 = vpop.eup %2693 }
0x1005   :  { %v1186_v44 = vmul.f32 %v2694_v42, %v1170_v26  ;;  %v1201_v46 = vadd.f32 %v2280_v1, %v1193_v43 }
0x1007   :  { %v1194_v45 = vmul.f32 %v2279_v40, %v1186_v44 }
0x1009   :  { %v1202_v48 = vadd.f32 %v2280_v1, %v1194_v45 }
0x100b   :  { %v1203_v50 = vpack.c.bf16 %v1202_v48, %v1201_v46 }
0x100d   :  { %2510 = vmatmul.mubr.msk.bf16.vlgmr.msra.gmra.mrb[32].mxu1 %vm94_vm0, %v1203_v50 }
0x100e   :  { %2515 = vmatprep.mubr.msk.bf16.mxu1 %vm2843_vm1, %v2842_v15 }
0x10e0   :  { %v1266_v52 = vpop.f32.mrb[32].mxu1 }
0x10e1   :  { %v2511_v53 = vpop.f32.mrb[33].mxu1  ;;  %v1267_v55 = vadd.f32 %v2286_v51, %v1266_v52 }
0x10e2   :  { %v1269_v54 = vpop.f32.mrb[34].mxu1 }
0x10e3   :  { %v1270_v56 = vadd.f32 %v2286_v51, %v1269_v54  ;;  %v2512_v57 = vpop.f32.mrb[35].mxu1 }
0x10e5   :  { %v3238_v59 = vpack.c.bf16 %v1270_v56, %v1267_v55  ;;  %v2290_v56 = vld [vmem:[%s3434_s6 + $0x10] sm:$0xf] }
0x10e6   :  { %v1573_v57 = vsel %vm461_vm4, %v2290_v56, 0 }
0x10e7   :  { %1280 = vrot.lane.b32.xlu1 %v3238_v59, %s2845_s19 }
0x10eb   :  { %1402 = vrot.lane.b32.xlu1 %v3238_v59, %s2844_s18 }
0x10ef   :  { %1400 = vrot.lane.b32.xlu1 %v3238_v59, %s2846_s20 }
0x1159   :  { %v1281_v60 = vpop.permute.xlu1 %1280 }
0x115a   :  { %v1286_v61 = vsel %vm216_vm2, %v1281_v60, 0  ;;  %v2291_v60 = vld [vmem:[%s3434_s6 + $0x14] sm:$0xf] }
0x115b   :  { %2514 = vmatpush3.bf16.xpose.msra.mxu1 %v1286_v61  ;;  %v1526_v61 = vsel %vm461_vm4, %v2291_v60, 0 }
0x115c   :  { %2525 = vmatprep.subr.bf16.mxu1 %v2842_v15 }
0x115d   :  { %v1403_v62 = vpop.permute.xlu1 %1402 }
0x115e   :  { %v1408_v63 = vsel %vm216_vm2, %v1403_v62, 0 }
0x1161   :  { %v1401_v2 = vpop.permute.xlu1 %1400 }
0x1162   :  { %2516 = vmatmul.mubr.msk.bf16.vlgmr.msra.gmra.mrb[36].mxu1 %vm216_vm2, %v3238_v59 }
0x1163   :  { %2526 = vmatpush3.bf16.xpose.msra.mxu1 %v1408_v63  ;;  %2527 = vmatprep.mubr.msk.bf16.mxu1 %vm2843_vm1, %v2842_v15 }
0x1164   :  { %2537 = vmatprep.subr.bf16.mxu1 %v2842_v15 }
0x116a   :  { %2528 = vmatmul.mubr.msk.bf16.vlgmr.msra.gmra.mrb[40].mxu1 %vm216_vm2, %v1401_v2 }
0x116b   :  { %2539 = vmatprep.mubr.msk.bf16.mxu1 %vm2843_vm1, %v2842_v15  ;;  %2538 = vmatpush3.bf16.msra.mxu1 %v1526_v61 }
0x116c   :  { %2549 = vmatprep.subr.bf16.mxu1 %v2842_v15 }
0x1235   :  { %v1322_v4 = vpop.f32.mrb[36].mxu1 }
0x1236   :  { %v1323_v5 = vadd.f32 %v1322_v4, %v3038_v47  ;;  %v2517_v7 = vpop.f32.mrb[37].mxu1 }
0x1237   :  { %v1325_v8 = vpop.f32.mrb[38].mxu1 }
0x1238   :  { %v1326_v9 = vadd.f32 %v1325_v8, %v3040_v49  ;;  %v2518_v10 = vpop.f32.mrb[39].mxu1  ;;  %v1329_v11 = vsel %vm264_vm3, %v1323_v5, -inf }
0x1239   :  { %1330 = vmax.xlane.f32.xlu0 %v1329_v11 }
0x123a   :  { %v1332_v12 = vsel %vm264_vm3, %v1326_v9, -inf }
0x123b   :  { %1333 = vmax.xlane.f32.xlu1 %v1332_v12 }
0x123d   :  { %v1444_v13 = vpop.f32.mrb[40].mxu1 }
0x123e   :  { %v1445_v16 = vadd.f32 %v1444_v13, %v3038_v47  ;;  %v2529_v17 = vpop.f32.mrb[41].mxu1 }
0x123f   :  { %v1447_v18 = vpop.f32.mrb[42].mxu1 }
0x1240   :  { %v1448_v41 = vadd.f32 %v1447_v18, %v3040_v49  ;;  %v2530_v19 = vpop.f32.mrb[43].mxu1  ;;  %v1451_v6 = vsel %vm264_vm3, %v1445_v16, -inf }
0x1241   :  { %1452 = vmax.xlane.f32.xlu0 %v1451_v6 }
0x1242   :  { %v1454_v20 = vsel %vm264_vm3, %v1448_v41, -inf }
0x1245   :  { %1455 = vmax.xlane.f32.xlu0 %v1454_v20 }
0x124c   :  { %1474 = vrot.lane.b32.xlu1 %v3238_v59, %s2850_s22 }
0x1250   :  { %1616 = vrot.lane.b32.xlu1 %v3238_v59, %s2849_s21 }
0x12c6   :  { %v1331_v21 = vpop.xlane.xlu0 %1330 }
0x12c7   :  { %v1335_v22 = vsub.f32 %v1323_v5, %v1331_v21 }
0x12c8   :  { %v1334_v47 = vpop.xlane.xlu1 %1333 }
0x12c9   :  { %v1337_v23 = vmul.f32 1.442695, %v1335_v22  ;;  %v1336_v24 = vsub.f32 %v1326_v9, %v1334_v47 }
0x12cb   :  { %2695 = vpow2.f32 %v1337_v23  ;;  %v1339_v49 = vmul.f32 1.442695, %v1336_v24 }
0x12cc   :  { %v1475_v50 = vpop.permute.xlu1 %1474 }
0x12cd   :  { %2697 = vpow2.f32 %v1339_v49  ;;  %v2739_v49 = vld [vmem:[#allocation5] sm:$0xff] }
0x12ce   :  { %v1453_v33 = vpop.xlane.xlu0 %1452 }
0x12cf   :  { %v1457_v25 = vsub.f32 %v1445_v16, %v1453_v33 }
0x12d0   :  { %v1617_v16 = vpop.permute.xlu1 %1616 }
0x12d1   :  { %v1459_v26 = vmul.f32 1.442695, %v1457_v25 }
0x12d2   :  { %v1456_v35 = vpop.xlane.xlu0 %1455 }
0x12d3   :  { %2699 = vpow2.f32 %v1459_v26  ;;  %v1458_v27 = vsub.f32 %v1448_v41, %v1456_v35  ;;  %v2740_v35 = vld [vmem:[#allocation5 + $0x8] sm:$0xff] }
0x12d5   :  { %v2696_v28 = vpop.eup %2695  ;;  %v1461_v29 = vmul.f32 1.442695, %v1458_v27 }
0x12d6   :  { %v1341_v30 = vsel %vm264_vm3, %v2696_v28, 0.0 }
0x12d7   :  { %v2698_v31 = vpop.eup %2697  ;;  %2701 = vpow2.f32 %v1461_v29  ;;  %1342 = vadd.xlane.f32.xlu0 %v1341_v30 }
0x12d8   :  { %v1344_v32 = vsel %vm264_vm3, %v2698_v31, 0.0 }
0x12db   :  { %1345 = vadd.xlane.f32.xlu0 %v1344_v32 }
0x12dd   :  { %v2700_v34 = vpop.eup %2699 }
0x12de   :  { %v1463_v36 = vsel %vm264_vm3, %v2700_v34, 0.0 }
0x12df   :  { %1464 = vadd.xlane.f32.xlu0 %v1463_v36 }
0x12e1   :  { %v2702_v37 = vpop.eup %2701 }
0x12e2   :  { %v1466_v38 = vsel %vm264_vm3, %v2702_v37, 0.0 }
0x12e3   :  { %1467 = vadd.xlane.f32.xlu0 %v1466_v38 }
0x12f9   :  { %1352 = vrot.lane.b32.xlu0 %v3238_v59, %s2847_s0 }
0x12fd   :  { %1618 = vrot.lane.b32.xlu0 %v3238_v59, %s2848_s16 }
0x1364   :  { %v1343_v39 = vpop.xlane.xlu0 %1342 }
0x1365   :  { %2703 = vrcp.f32 %v1343_v39 }
0x1368   :  { %v1346_v0 = vpop.xlane.xlu0 %1345 }
0x1369   :  { %2705 = vrcp.f32 %v1346_v0 }
0x136c   :  { %v1465_v40 = vpop.xlane.xlu0 %1464 }
0x136d   :  { %2707 = vrcp.f32 %v1465_v40 }
0x136f   :  { %v2704_v43 = vpop.eup %2703 }
0x1370   :  { %v1468_v42 = vpop.xlane.xlu0 %1467  ;;  %v1349_v1 = vmul.f32 %v2704_v43, %v2696_v28 }
0x1371   :  { %2709 = vrcp.f32 %v1468_v42 }
0x1373   :  { %v2706_v44 = vpop.eup %2705 }
0x1374   :  { %v1350_v45 = vmul.f32 %v2706_v44, %v2698_v31  ;;  %v1353_v46 = vpop.permute.xlu0 %1352 }
0x1375   :  { %2520 = vmatpush3.bf16.msra.mxu0 %v1353_v46 }
0x1376   :  { %v1351_v48 = vpack.c.bf16 %v1350_v45, %v1349_v1  ;;  %2531 = vmatprep.subr.bf16.mxu0 %v2842_v15 }
0x1377   :  { %v2708_v51 = vpop.eup %2707 }
0x1378   :  { %2522 = vmatmul.mubr.msk.bf16.vlgmr.msra.gmra.mrb[28].mxu0 %vm264_vm3, %v1351_v48  ;;  %v1471_v53 = vmul.f32 %v2708_v51, %v2700_v34  ;;  %v1619_v9 = vpop.permute.xlu0 %1618 }
0x1379   :  { %2532 = vmatpush3.bf16.msra.mxu0 %v1475_v50  ;;  %2533 = vmatprep.mubr.msk.bf16.mxu0 %vm2843_vm1, %v2842_v15  ;;  %v1624_v13 = vsel %vm216_vm2, %v1619_v9, 0 }
0x137a   :  { %2543 = vmatprep.subr.bf16.mxu0 %v2842_v15 }
0x137b   :  { %v2710_v52 = vpop.eup %2709 }
0x137c   :  { %v1472_v54 = vmul.f32 %v2710_v52, %v2702_v37 }
0x137e   :  { %v1473_v55 = vpack.c.bf16 %v1472_v54, %v1471_v53 }
0x1380   :  { %2534 = vmatmul.mubr.msk.bf16.vlgmr.msra.gmra.mrb[32].mxu0 %vm264_vm3, %v1473_v55  ;;  %v2292_v55 = vld [vmem:[%s3434_s6 + $0x18] sm:$0xf] }
0x1381   :  { %2545 = vmatprep.mubr.msk.bf16.mxu0 %vm2843_vm1, %v2842_v15  ;;  %2544 = vmatpush3.bf16.msra.mxu0 %v1573_v57  ;;  %v1742_v56 = vsel %vm461_vm4, %v2292_v55, 0 }
0x1382   :  { %2555 = vmatprep.subr.bf16.mxu0 %v2842_v15 }
0x144b   :  { %v1392_v62 = vpop.f32.mrb[28].mxu0 }
0x144c   :  { %v2523_v63 = vpop.f32.mrb[29].mxu0 }
0x144d   :  { %v1395_v2 = vpop.f32.mrb[30].mxu0 }
0x144e   :  { %v1399_v4 = vpack.c.bf16 %v1395_v2, %v1392_v62  ;;  %v2524_v5 = vpop.f32.mrb[31].mxu0 }
0x1450   :  { %2546 = vmatmul.mubr.msk.bf16.vlgmr.msra.gmra.mrb[36].mxu0 %vm216_vm2, %v1399_v4 }
0x1451   :  { %2557 = vmatprep.mubr.msk.bf16.mxu0 %vm2843_vm1, %v2842_v15 }
0x1453   :  { %v1514_v7 = vpop.f32.mrb[32].mxu0 }
0x1454   :  { %v2535_v8 = vpop.f32.mrb[33].mxu0 }
0x1455   :  { %v1517_v10 = vpop.f32.mrb[34].mxu0 }
0x1456   :  { %v1521_v11 = vpack.c.bf16 %v1517_v10, %v1514_v7  ;;  %v2536_v12 = vpop.f32.mrb[35].mxu0 }
0x1458   :  { %2540 = vmatmul.mubr.msk.bf16.vlgmr.msra.gmra.mrb[44].mxu1 %vm216_vm2, %v1521_v11 }
0x1459   :  { %2550 = vmatpush3.bf16.xpose.msra.mxu1 %v1624_v13  ;;  %2551 = vmatprep.mubr.msk.bf16.mxu1 %vm2843_vm1, %v2842_v15 }
0x145a   :  { %2561 = vmatprep.subr.bf16.mxu1 %v2842_v15 }
0x1460   :  { %2552 = vmatmul.mubr.msk.bf16.vlgmr.msra.gmra.mrb[48].mxu1 %vm216_vm2, %v1617_v16 }
0x1461   :  { %2563 = vmatprep.mubr.msk.bf16.mxu1 %vm2843_vm1, %v2842_v15  ;;  %2562 = vmatpush3.bf16.msra.mxu1 %v1742_v56 }
0x1462   :  { %2573 = vmatprep.subr.bf16.mxu1 %v2842_v15 }
0x1523   :  { %v1609_v17 = vpop.f32.mrb[36].mxu0 }
0x1524   :  { %v2547_v18 = vpop.f32.mrb[37].mxu0 }
0x1525   :  { %v1612_v41 = vpop.f32.mrb[38].mxu0 }
0x1526   :  { %v2548_v19 = vpop.f32.mrb[39].mxu0 }
0x152b   :  { %v1562_v6 = vpop.f32.mrb[44].mxu1 }
0x152c   :  { %v3306_v20 = vadd.f32 %v1609_v17, %v1562_v6  ;;  %v2541_v21 = vpop.f32.mrb[45].mxu1 }
0x152d   :  { %v1565_v22 = vpop.f32.mrb[46].mxu1 }
0x152e   :  { %v3308_v47 = vadd.f32 %v1612_v41, %v1565_v22  ;;  %v2542_v23 = vpop.f32.mrb[47].mxu1 }
0x1533   :  { %v1660_v24 = vpop.f32.mrb[48].mxu1 }
0x1534   :  { %v1661_v33 = vadd.f32 %v2739_v49, %v1660_v24  ;;  %v2553_v25 = vpop.f32.mrb[49].mxu1 }
0x1535   :  { %v1663_v26 = vpop.f32.mrb[50].mxu1 }
0x1536   :  { %v1664_v27 = vadd.f32 %v2740_v35, %v1663_v26  ;;  %v2554_v28 = vpop.f32.mrb[51].mxu1  ;;  %v1667_v29 = vsel %vm264_vm3, %v1661_v33, -inf }
0x1537   :  { %1668 = vmax.xlane.f32.xlu0 %v1667_v29 }
0x1538   :  { %v1670_v30 = vsel %vm264_vm3, %v1664_v27, -inf }
0x1539   :  { %1671 = vmax.xlane.f32.xlu1 %v1670_v30 }
0x154a   :  { %1789 = vrot.lane.b32.xlu1 %v3238_v59, %s2853_s28 }
0x154e   :  { %1787 = vrot.lane.b32.xlu1 %v3238_v59, %s2852_s27 }
0x15c4   :  { %v1669_v31 = vpop.xlane.xlu0 %1668 }
0x15c5   :  { %v1673_v32 = vsub.f32 %v1661_v33, %v1669_v31 }
0x15c6   :  { %v1672_v34 = vpop.xlane.xlu1 %1671 }
0x15c7   :  { %v1675_v36 = vmul.f32 1.442695, %v1673_v32  ;;  %v1674_v37 = vsub.f32 %v1664_v27, %v1672_v34 }
0x15c9   :  { %2711 = vpow2.f32 %v1675_v36  ;;  %v1677_v38 = vmul.f32 1.442695, %v1674_v37 }
0x15ca   :  { %v1790_v51 = vpop.permute.xlu1 %1789 }
0x15cb   :  { %2713 = vpow2.f32 %v1677_v38  ;;  %v1795_v53 = vsel %vm216_vm2, %v1790_v51, 0 }
0x15ce   :  { %v1788_v54 = vpop.permute.xlu1 %1787 }
0x15d3   :  { %v2712_v39 = vpop.eup %2711 }
0x15d4   :  { %v1679_v0 = vsel %vm264_vm3, %v2712_v39, 0.0 }
0x15d5   :  { %v2714_v40 = vpop.eup %2713  ;;  %1680 = vadd.xlane.f32.xlu0 %v1679_v0 }
0x15d6   :  { %v1682_v42 = vsel %vm264_vm3, %v2714_v40, 0.0 }
0x15d9   :  { %1683 = vadd.xlane.f32.xlu0 %v1682_v42 }
0x15ef   :  { %1690 = vrot.lane.b32.xlu0 %v3238_v59, %s2851_s24 }
0x1662   :  { %v1681_v43 = vpop.xlane.xlu0 %1680 }
0x1663   :  { %2715 = vrcp.f32 %v1681_v43  ;;  %v2307_v43 = vld [vmem:[%s3435_s7 + $0x1] ss:$0 sm:$0xff] }
0x1666   :  { %v1684_v44 = vpop.xlane.xlu0 %1683 }
0x1667   :  { %2717 = vrcp.f32 %v1684_v44 }
0x166a   :  { %v1691_v1 = vpop.permute.xlu0 %1690 }
0x166b   :  { %2556 = vmatpush3.bf16.msra.mxu0 %v1691_v1 }
0x166c   :  { %2567 = vmatprep.subr.bf16.mxu0 %v2842_v15 }
0x166d   :  { %v2716_v45 = vpop.eup %2715 }
0x166e   :  { %v1687_v48 = vmul.f32 %v2716_v45, %v2712_v39 }
0x1671   :  { %v2718_v46 = vpop.eup %2717 }
0x1672   :  { %v1688_v50 = vmul.f32 %v2718_v46, %v2714_v40 }
0x1674   :  { %v1689_v52 = vpack.c.bf16 %v1688_v50, %v1687_v48 }
0x1676   :  { %2558 = vmatmul.mubr.msk.bf16.vlgmr.msra.gmra.mrb[40].mxu0 %vm264_vm3, %v1689_v52 }
0x1677   :  { %2568 = vmatpush3.bf16.xpose.msra.mxu0 %v1795_v53  ;;  %2569 = vmatprep.mubr.msk.bf16.mxu0 %vm2843_vm1, %v2842_v15 }
0x1678   :  { %2579 = vmatprep.subr.bf16.mxu0 %v2842_v15 }
0x167e   :  { %2570 = vmatmul.mubr.msk.bf16.vlgmr.msra.gmra.mrb[44].mxu0 %vm216_vm2, %v1788_v54 }
0x167f   :  { %2581 = vmatprep.mubr.msk.bf16.mxu0 %vm2843_vm1, %v2842_v15 }
0x1749   :  { %v1730_v57 = vpop.f32.mrb[40].mxu0 }
0x174a   :  { %v2559_v60 = vpop.f32.mrb[41].mxu0 }
0x174b   :  { %v1733_v61 = vpop.f32.mrb[42].mxu0 }
0x174c   :  { %v1737_v62 = vpack.c.bf16 %v1733_v61, %v1730_v57  ;;  %v2560_v63 = vpop.f32.mrb[43].mxu0 }
0x174e   :  { %2564 = vmatmul.mubr.msk.bf16.vlgmr.msra.gmra.mrb[52].mxu1 %vm216_vm2, %v1737_v62 }
0x174f   :  { %2575 = vmatprep.mubr.msk.bf16.mxu1 %vm2843_vm1, %v2842_v15 }
0x1751   :  { %v1831_v2 = vpop.f32.mrb[44].mxu0 }
0x1752   :  { %v1832_v4 = vadd.f32 %v2739_v49, %v1831_v2  ;;  %v2571_v5 = vpop.f32.mrb[45].mxu0  ;;  %v2637_v2 = vld [vmem:[%s3438_s10 + $0x10] sm:$0xff]  }
0x1753   :  { %v1834_v7 = vpop.f32.mrb[46].mxu0 }
0x1754   :  { %v1835_v8 = vadd.f32 %v2740_v35, %v1834_v7  ;;  %v2572_v9 = vpop.f32.mrb[47].mxu0  ;;  %v1838_v10 = vsel %vm264_vm3, %v1832_v4, -inf }
0x1755   :  { %1839 = vmax.xlane.f32.xlu1 %v1838_v10 }
0x1756   :  { %v1841_v11 = vsel %vm264_vm3, %v1835_v8, -inf }
0x1757   :  { %1842 = vmax.xlane.f32.xlu0 %v1841_v11 }
0x1766   :  { %1861 = vrot.lane.b32.xlu1 %v3238_v59, %s2854_s17 }
0x17e2   :  { %v1840_v12 = vpop.xlane.xlu1 %1839 }
0x17e3   :  { %v1844_v13 = vsub.f32 %v1832_v4, %v1840_v12  ;;  %v2638_v4 = vld [vmem:[%s3438_s10 + $0x18] sm:$0xff]  }
0x17e4   :  { %v1843_v16 = vpop.xlane.xlu0 %1842 }
0x17e5   :  { %v1846_v17 = vmul.f32 1.442695, %v1844_v13  ;;  %v1845_v18 = vsub.f32 %v1835_v8, %v1843_v16  ;;  %v2310_v16 = vld [vmem:[%s3436_s8 + $0x1] ss:$0 sm:$0xff] }
0x17e6   :  { %v1862_v41 = vpop.permute.xlu1 %1861 }
0x17e7   :  { %2719 = vpow2.f32 %v1846_v17  ;;  %v1848_v19 = vmul.f32 1.442695, %v1845_v18  ;;  %2574 = vmatpush3.bf16.msra.mxu1 %v1862_v41 }
0x17e8   :  { %2585 = vmatprep.subr.bf16.mxu1 %v2842_v15 }
0x17e9   :  { %2721 = vpow2.f32 %v1848_v19  ;;  %v2311_v19 = vld [vmem:[%s3437_s9 + $0x1] ss:$0 sm:$0xff] }
0x17f1   :  { %v2720_v6 = vpop.eup %2719 }
0x17f2   :  { %v1850_v21 = vsel %vm264_vm3, %v2720_v6, 0.0 }
0x17f3   :  { %v2722_v22 = vpop.eup %2721  ;;  %1851 = vadd.xlane.f32.xlu0 %v1850_v21 }
0x17f4   :  { %v1853_v23 = vsel %vm264_vm3, %v2722_v22, 0.0 }
0x17f7   :  { %1854 = vadd.xlane.f32.xlu0 %v1853_v23 }
0x1821   :  { %v1778_v59 = vpop.f32.mrb[52].mxu1 }
0x1822   :  { %v1785_v24 = vadd.f32 %v1778_v59, %v3306_v20  ;;  %v2565_v49 = vpop.f32.mrb[53].mxu1  ;;  %v2293_v20 = vld [vmem:[%s3434_s6 + $0x1c] sm:$0xf]  ;;  %v2639_v59 = vld [vmem:[%s3440_s12 + $0x20] sm:$0xff]  }
0x1823   :  { %v1781_v33 = vpop.f32.mrb[54].mxu1  ;;  %v2641_v49 = vld [vmem:[%s3440_s12 + $0x30] sm:$0xff]  }
0x1824   :  { %v1786_v25 = vadd.f32 %v1781_v33, %v3308_v47  ;;  %v2566_v26 = vpop.f32.mrb[55].mxu1  ;;  %v1913_v47 = vsel %vm461_vm4, %v2293_v20, 0  ;;  %v2642_v33 = vld [vmem:[%s3440_s12 + $0x38] sm:$0xff]  }
0x1825   :  { %2580 = vmatpush3.bf16.msra.mxu0 %v1913_v47 }
0x1826   :  { %2593 = vmatprep.subr.bf16.mxu0 %v2842_v15 }
0x1880   :  { %v1852_v35 = vpop.xlane.xlu0 %1851 }
0x1881   :  { %2723 = vrcp.f32 %v1852_v35 }
0x1884   :  { %v1855_v27 = vpop.xlane.xlu0 %1854 }
0x1885   :  { %2725 = vrcp.f32 %v1855_v27 }
0x188b   :  { %v2724_v28 = vpop.eup %2723 }
0x188c   :  { %v1858_v30 = vmul.f32 %v2724_v28, %v2720_v6 }
0x188f   :  { %v2726_v29 = vpop.eup %2725 }
0x1890   :  { %v1859_v31 = vmul.f32 %v2726_v29, %v2722_v22 }
0x1892   :  { %v1860_v32 = vpack.c.bf16 %v1859_v31, %v1858_v30 }
0x1894   :  { %2576 = vmatmul.mubr.msk.bf16.vlgmr.msra.gmra.mrb[56].mxu1 %vm264_vm3, %v1860_v32 }
0x1895   :  { %2589 = vmatprep.mubr.msk.bf16.mxu1 %vm2843_vm1, %v2842_v15  ;;  %2586 = vmatpush3.bf16.msra.mxu1 %v2637_v2 }
0x1896   :  { %2587 = vmatprep.subr.bf16.mxu1 %v2842_v15 }
0x1899   :  { %2588 = vmatpush3.bf16.msra.mxu1 %v2638_v4 }
0x1967   :  { %v1901_v34 = vpop.f32.mrb[56].mxu1 }
0x1968   :  { %v2577_v36 = vpop.f32.mrb[57].mxu1 }
0x1969   :  { %v1904_v37 = vpop.f32.mrb[58].mxu1 }
0x196a   :  { %v1908_v38 = vpack.c.bf16 %v1904_v37, %v1901_v34  ;;  %v2578_v39 = vpop.f32.mrb[59].mxu1 }
0x196c   :  { %2582 = vmatmul.mubr.msk.bf16.vlgmr.msra.gmra.mrb[48].mxu0 %vm216_vm2, %v1908_v38 }
0x196d   :  { %2601 = vmatprep.mubr.msk.bf16.mxu0 %vm2843_vm1, %v2842_v15  ;;  %2594 = vmatpush3.bf16.msra.mxu0 %v2639_v59 }
0x196e   :  { %2595 = vmatprep.subr.bf16.mxu0 %v2842_v15 }
0x1a3f   :  { %v1949_v0 = vpop.f32.mrb[48].mxu0 }
0x1a40   :  { %v1956_v40 = vadd.f32 %v1949_v0, %v1785_v24  ;;  %v2583_v42 = vpop.f32.mrb[49].mxu0  ;;  %v2640_v24 = vld [vmem:[%s3440_s12 + $0x28] sm:$0xff]  }
0x1a41   :  { %v1952_v44 = vpop.f32.mrb[50].mxu0  ;;  %2596 = vmatpush3.bf16.msra.mxu0 %v2640_v24  ;;  %v2329_v24 = vld [vmem:[%s3441_s13 + $0x1] ss:$0 sm:$0xff] }
0x1a42   :  { %v1958_v1 = vadd.f32 %v1956_v40, %v3205_v14  ;;  %v1957_v45 = vadd.f32 %v1952_v44, %v1786_v25  ;;  %v2584_v46 = vpop.f32.mrb[51].mxu0  ;;  %2597 = vmatprep.subr.bf16.mxu0 %v2842_v15  ;;  %v2316_v25 = vld [vmem:[#allocation7 + $0x1] ss:$0 sm:$0xff] }
0x1a44   :  { %v3361_v48 = vadd.f32 %v2307_v43, %v1958_v1  ;;  %v1959_v50 = vadd.f32 %v1957_v45, %v3208_v3 }
0x1a45   :  { %2598 = vmatpush3.bf16.msra.mxu0 %v2641_v49 }
0x1a46   :  { %v3364_v51 = vadd.f32 %v2307_v43, %v1959_v50  ;;  %v1974_v52 = vsel %vm94_vm0, %v3361_v48, 0.0  ;;  %2599 = vmatprep.subr.bf16.mxu0 %v2842_v15 }
0x1a47   :  { %1975 = vadd.xlane.f32.xlu0 %v1974_v52 }
0x1a48   :  { %v1977_v53 = vsel %vm94_vm0, %v3364_v51, 0.0 }
0x1a49   :  { %2600 = vmatpush3.bf16.msra.mxu0 %v2642_v33 }
0x1a4b   :  { %1978 = vadd.xlane.f32.xlu0 %v1977_v53 }
0x1ad4   :  { %v1976_v54 = vpop.xlane.xlu0 %1975 }
0x1ad5   :  { %v1980_v55 = vmul.f32 0.03125, %v1976_v54 }
0x1ad7   :  { %v1982_v14 = vsub.f32 %v3361_v48, %v1980_v55 }
0x1ad8   :  { %v1979_v56 = vpop.xlane.xlu0 %1978 }
0x1ad9   :  { %v1981_v57 = vmul.f32 0.03125, %v1979_v56  ;;  %v1984_v60 = vmul.f32 %v1982_v14, %v1982_v14 }
0x1adb   :  { %v1983_v61 = vsub.f32 %v3364_v51, %v1981_v57  ;;  %v1986_v3 = vsel %vm94_vm0, %v1984_v60, 0.0 }
0x1adc   :  { %1987 = vadd.xlane.f32.xlu0 %v1986_v3 }
0x1add   :  { %v1985_v62 = vmul.f32 %v1983_v61, %v1983_v61 }
0x1adf   :  { %v1989_v63 = vsel %vm94_vm0, %v1985_v62, 0.0 }
0x1ae0   :  { %1990 = vadd.xlane.f32.xlu0 %v1989_v63 }
0x1b69   :  { %v1988_v5 = vpop.xlane.xlu0 %1987 }
0x1b6a   :  { %v1992_v7 = vmul.f32 0.03125, %v1988_v5 }
0x1b6c   :  { %v1994_v8 = vadd.f32 1e-05, %v1992_v7 }
0x1b6d   :  { %v1991_v9 = vpop.xlane.xlu0 %1990 }
0x1b6e   :  { %2727 = vrsqrt.f32 %v1994_v8  ;;  %v1993_v10 = vmul.f32 0.03125, %v1991_v9 }
0x1b70   :  { %v1995_v11 = vadd.f32 1e-05, %v1993_v10 }
0x1b72   :  { %2729 = vrsqrt.f32 %v1995_v11 }
0x1b78   :  { %v2728_v12 = vpop.eup %2727 }
0x1b79   :  { %v1998_v13 = vmul.f32 %v2728_v12, %v1982_v14 }
0x1b7b   :  { %v2006_v18 = vmul.f32 %v2310_v16, %v1998_v13 }
0x1b7c   :  { %v2730_v17 = vpop.eup %2729 }
0x1b7d   :  { %v1999_v41 = vmul.f32 %v2730_v17, %v1983_v61  ;;  %v2014_v21 = vadd.f32 %v2311_v19, %v2006_v18 }
0x1b7f   :  { %v2007_v6 = vmul.f32 %v2310_v16, %v1999_v41 }
0x1b81   :  { %v2015_v22 = vadd.f32 %v2311_v19, %v2007_v6 }
0x1b83   :  { %v2016_v23 = vpack.c.bf16 %v2015_v22, %v2014_v21 }
0x1b85   :  { %2590 = vmatmul.mubr.msk.bf16.vlgmr.msra.gmra.mrb[60].mxu1 %vm94_vm0, %v2016_v23 }
0x1c58   :  { %v2079_v26 = vpop.f32.mrb[60].mxu1 }
0x1c59   :  { %v2080_v35 = vadd.f32 %v2316_v25, %v2079_v26  ;;  %v2591_v27 = vpop.f32.mrb[61].mxu1 }
0x1c5a   :  { %v2082_v28 = vpop.f32.mrb[62].mxu1 }
0x1c5b   :  { %v2088_v29 = vmul.f32 0.70710677, %v2080_v35  ;;  %v2083_v30 = vadd.f32 %v2316_v25, %v2082_v28  ;;  %v2592_v31 = vpop.f32.mrb[63].mxu1  ;;  %v2086_v19 = vmul.f32 0.5, %v2080_v35 }
0x1c5d   :  { %v2094_v32 = vand.u32 2147483647, %v2088_v29  ;;  %v2089_v20 = vmul.f32 0.70710677, %v2083_v30  ;;  %vm2090_vm8 = vcmp.lt.f32.partialorder %v2088_v29, 0.0  ;;  %v2087_v6 = vmul.f32 0.5, %v2083_v30 }
0x1c5e   :  { %v2092_v11 = vsel %vm2090_vm8, -1.0, %v2855_v58 }
0x1c5f   :  { %v2096_v47 = vmul.f32 0.3275911, %v2094_v32  ;;  %v2095_v34 = vand.u32 2147483647, %v2089_v20  ;;  %v2120_v38 = vsub.f32 0.0, %v2094_v32  ;;  %vm2091_vm9 = vcmp.lt.f32.partialorder %v2089_v20, 0.0 }
0x1c60   :  { %v2093_v17 = vsel %vm2091_vm9, -1.0, %v2855_v58 }
0x1c61   :  { %v2098_v36 = vadd.f32 1.0, %v2096_v47  ;;  %v2097_v37 = vmul.f32 0.3275911, %v2095_v34  ;;  %v2121_v39 = vsub.f32 0.0, %v2095_v34  ;;  %v2122_v40 = vmul.f32 %v2120_v38, %v2094_v32 }
0x1c63   :  { %2731 = vrcp.f32 %v2098_v36  ;;  %v2099_v15 = vadd.f32 1.0, %v2097_v37  ;;  %v2123_v1 = vmul.f32 %v2121_v39, %v2095_v34  ;;  %v2124_v45 = vmul.f32 1.442695, %v2122_v40 }
0x1c65   :  { %2733 = vrcp.f32 %v2099_v15  ;;  %v2126_v54 = vmul.f32 1.442695, %v2123_v1 }
0x1c66   :  { %2735 = vpow2.f32 %v2124_v45 }
0x1c67   :  { %2737 = vpow2.f32 %v2126_v54 }
0x1c6d   :  { %v2732_v0 = vpop.eup %2731 }
0x1c6e   :  { %v2102_v42 = vmul.f32 1.0614054, %v2732_v0 }
0x1c6f   :  { %v2734_v43 = vpop.eup %2733 }
0x1c70   :  { %v2104_v44 = vadd.f32 -1.4531521, %v2102_v42  ;;  %v2103_v46 = vmul.f32 1.0614054, %v2734_v43  ;;  %v2736_v4 = vpop.eup %2735 }
0x1c71   :  { %v2738_v9 = vpop.eup %2737 }
0x1c72   :  { %v2106_v50 = vmul.f32 %v2732_v0, %v2104_v44  ;;  %v2105_v52 = vadd.f32 -1.4531521, %v2103_v46 }
0x1c74   :  { %v2108_v53 = vadd.f32 1.4214138, %v2106_v50  ;;  %v2107_v55 = vmul.f32 %v2734_v43, %v2105_v52 }
0x1c76   :  { %v2110_v14 = vmul.f32 %v2732_v0, %v2108_v53  ;;  %v2109_v56 = vadd.f32 1.4214138, %v2107_v55 }
0x1c78   :  { %v2112_v57 = vadd.f32 -0.28449672, %v2110_v14  ;;  %v2111_v60 = vmul.f32 %v2734_v43, %v2109_v56 }
0x1c7a   :  { %v2114_v61 = vmul.f32 %v2732_v0, %v2112_v57  ;;  %v2113_v3 = vadd.f32 -0.28449672, %v2111_v60 }
0x1c7c   :  { %v2116_v62 = vadd.f32 0.2548296, %v2114_v61  ;;  %v2115_v63 = vmul.f32 %v2734_v43, %v2113_v3 }
0x1c7e   :  { %v2118_v2 = vmul.f32 %v2732_v0, %v2116_v62  ;;  %v2117_v5 = vadd.f32 0.2548296, %v2115_v63 }
0x1c80   :  { %v2128_v7 = vmul.f32 %v2736_v4, %v2118_v2  ;;  %v2119_v8 = vmul.f32 %v2734_v43, %v2117_v5 }
0x1c82   :  { %v2130_v10 = vsub.f32 1.0, %v2128_v7  ;;  %v2129_v12 = vmul.f32 %v2738_v9, %v2119_v8 }
0x1c84   :  { %v2132_v13 = vmul.f32 %v2130_v10, %v2092_v11  ;;  %v2131_v16 = vsub.f32 1.0, %v2129_v12 }
0x1c86   :  { %v2134_v18 = vadd.f32 1.0, %v2132_v13  ;;  %v2133_v41 = vmul.f32 %v2131_v16, %v2093_v17 }
0x1c88   :  { %v2135_v21 = vadd.f32 1.0, %v2133_v41  ;;  %v2136_v22 = vmul.f32 %v2134_v18, %v2086_v19 }
0x1c8a   :  { %v2137_v23 = vmul.f32 %v2135_v21, %v2087_v6 }
0x1c8c   :  { %v2138_v59 = vpack.c.bf16 %v2137_v23, %v2136_v22 }
0x1c8e   :  { %2602 = vmatmul.mubr.msk.bf16.vlgmr.msra.gmra.mrb[52].mxu0 %vm1110_vm7, %v2138_v59 }
0x1d61   :  { %v2217_v49 = vpop.f32.mrb[52].mxu0 }
0x1d62   :  { %v2218_v33 = vadd.f32 %v2329_v24, %v2217_v49  ;;  %v2603_v25 = vpop.f32.mrb[53].mxu0 }
0x1d63   :  { %v2220_v26 = vpop.f32.mrb[54].mxu0 }
0x1d64   :  { %v2224_v58 = vadd.f32 %v2218_v33, %v3361_v48  ;;  %v2221_v35 = vadd.f32 %v2329_v24, %v2220_v26  ;;  %v2604_v27 = vpop.f32.mrb[55].mxu0 }
0x1d66   :  { %2226 = vst.msk [vmem:[#allocation8] sm:$0xff] %vm94_vm0, %v2224_v58  ;;  %v2225_v28 = vadd.f32 %v2221_v35, %v3364_v51 }
0x1d68   :  { %2227 = vst.msk [vmem:[#allocation8 + $0x8] sm:$0xff] %vm94_vm0, %v2225_v28 }
0x1d69   :  { %2818 = shalt.err (!%p2815_p0)
}
0x1d6a   :  { %s2819_s19 = scalar_lea.hbm %s3442_s14, 256 }
0x1d6b   :  { %p2820_p1 = scmp.ne.s32.totalorder %s3442_s14, %s2819_s19  ;;  %p2823_p2 = scmp.lt.u32.totalorder %s2819_s19, %s3442_s14 }
0x1d6d   :  { %p2825_p3 = pnand %p2823_p2, %p2820_p1 }
0x1d6f   :  { %2828 = shalt.err (!%p2825_p3)
}
0x1d70   :  { %s3444_s6 = smov 128  }
0x1d71   :  { %2239 = dma.vmem_to_hbm [thread:$0]  %s2234_s3, 256, %s3442_s14, [#allocation4], %s3444_s6, %s3444_s6, %s2838_s26  }
0x1d72   :  { %2833 = dma.done.wait [#allocation4], 256  }
0x1d73   :  { %2834 = vsyncadd [#allocation4], 4294967040 }
0x1d74   :  { %2243 = vsyncpa [#allocation3], 1 }
0x1d75   :  { %2244 = vsyncpa [#allocation6], 1 }
0x1d76   :  { %2245 = vsyncpa [#allocation4], 1 }

</bundles_post_ra>
